<compile_context>
chip_gen: v7x
topology: tpu7x:2x2x1
jax: 0.10.0
libtpu: 0.0.40
codegen_flags: <defaults>
</compile_context>

<pallas_src>
import functools
import math

import jax
import jax.numpy as jnp
import numpy as np
from jax import lax
from jax.experimental import pallas as pl
from jax.experimental.pallas import tpu as pltpu


def gpt2_rope_block_kernel(x_ref, ln1w_ref, ln2w_ref, wattn_ref, wproj_ref,
                           wfc_ref, wfcp_ref, cos_ref, sin_ref, o_ref,
                           *, n_head: int, head_dim: int, mlp_chunk: int):
    f32 = jnp.float32
    bf16 = jnp.bfloat16

    x = x_ref[0]                       # (T, C) f32, one batch element
    T, C = x.shape
    H, D = n_head, head_dim
    half = D // 2
    C2 = C // 2

    ln1w = ln1w_ref[...]               # (1, C) f32
    ln2w = ln2w_ref[...]               # (1, C) f32
    cosT = cos_ref[...]                # (T, C//2) f32, per-head tiled
    sinT = sin_ref[...]                # (T, C//2) f32

    def layernorm(v, w):
        mu = jnp.mean(v, axis=-1, keepdims=True)
        vc = v - mu
        var = jnp.mean(vc * vc, axis=-1, keepdims=True)
        return vc * lax.rsqrt(var + 1e-5) * w

    # ---- attention branch ----
    h1 = layernorm(x, ln1w).astype(bf16)
    qkv = jnp.dot(h1, wattn_ref[...], preferred_element_type=f32)     # (T, 3C) f32

    # Batched rotate-half RoPE over all heads at once (full-lane FMAs).
    # W_attn q/k columns are permuted host-side to [all reals | all imags] per block,
    # and the 1/sqrt(D) scale was folded into the q columns host-side.
    q_re, q_im = qkv[:, 0:C2], qkv[:, C2:C]
    k_re, k_im = qkv[:, C:C + C2], qkv[:, C + C2:2 * C]
    q_rot_re = (q_re * cosT - q_im * sinT).astype(bf16)
    q_rot_im = (q_re * sinT + q_im * cosT).astype(bf16)
    k_rot_re = (k_re * cosT - k_im * sinT).astype(bf16)
    k_rot_im = (k_re * sinT + k_im * cosT).astype(bf16)

    rows = lax.broadcasted_iota(jnp.int32, (T, T), 0)
    cols = lax.broadcasted_iota(jnp.int32, (T, T), 1)
    causal = rows >= cols

    attn = jnp.zeros((T, C), f32)
    for h in range(H):
        a, b = h * half, (h + 1) * half
        # head h in rotate-half order [re' | im'] (same order in q and k -> same dot)
        qh = jnp.concatenate([q_rot_re[:, a:b], q_rot_im[:, a:b]], axis=1)   # (T, D) bf16
        kh = jnp.concatenate([k_rot_re[:, a:b], k_rot_im[:, a:b]], axis=1)   # (T, D) bf16
        vh = qkv[:, 2 * C + h * D:2 * C + (h + 1) * D].astype(bf16)          # (T, D)

        # q @ k^T without an explicit transpose (contract last dims)
        s = lax.dot_general(qh, kh, dimension_numbers=(((1,), (1,)), ((), ())),
                            preferred_element_type=f32)                     # (T, T)
        s = jnp.where(causal, s, -1e30)
        m = jnp.max(s, axis=-1, keepdims=True)
        p = jnp.exp(s - m)
        p = p * pl.reciprocal(jnp.sum(p, axis=-1, keepdims=True), approx=True)

        yh = jnp.dot(p.astype(bf16), vh, preferred_element_type=f32)         # (T, D)
        # fold head output directly into the projection GEMM (no concat of heads)
        attn = attn + jnp.dot(yh.astype(bf16), wproj_ref[h * D:(h + 1) * D, :],
                              preferred_element_type=f32)

    x1 = x + attn                      # residual 1 (dropout is eval-mode no-op)

    # ---- MLP branch, chunked over the 4C hidden dimension ----
    h2 = layernorm(x1, ln2w).astype(bf16)
    hidden = 4 * C
    mlp = jnp.zeros((T, C), f32)
    for c0 in range(0, hidden, mlp_chunk):
        g = jnp.dot(h2, wfc_ref[:, c0:c0 + mlp_chunk], preferred_element_type=f32)
        # tanh-approx GELU (EUP path); within ~1e-3 of exact erf GELU
        g = 0.5 * g * (1.0 + jnp.tanh(0.7978845608028654 * (g + 0.044715 * g * g * g)))
        mlp = mlp + jnp.dot(g.astype(bf16), wfcp_ref[c0:c0 + mlp_chunk, :],
                            preferred_element_type=f32)

    o_ref[0] = x1 + mlp                # residual 2


def _rotate_half_perm(C, n_head):
    """Column permutation: interleaved (re,im) pairs -> [all heads' reals | all heads' imags]."""
    D = C // n_head
    half = D // 2
    perm_re = np.asarray([h * D + 2 * j for h in range(n_head) for j in range(half)],
                         dtype=np.int32)
    perm_im = perm_re + 1
    return np.concatenate([perm_re, perm_im])


def gpt2_block_pallas(x, params, cos_half, sin_half, n_head):
    """x: (B,T,C) f32. cos_half/sin_half: (T, D//2) RoPE tables."""
    B, T, C = x.shape
    D = C // n_head
    assert D % 2 == 0

    # host-side: permute q/k output columns of W_attn into the batched rotate-half
    # layout, fold the 1/sqrt(D) scale into the q columns, cast to bf16.
    perm = _rotate_half_perm(C, n_head)
    wattn = params["wattn"]
    wq = (wattn[:, 0:C] * (1.0 / math.sqrt(D)))[:, perm]
    wk = wattn[:, C:2 * C][:, perm]
    wv = wattn[:, 2 * C:3 * C]
    wattn_p = jnp.concatenate([wq, wk, wv], axis=1).astype(jnp.bfloat16)
    wproj = params["wproj"].astype(jnp.bfloat16)
    wfc = params["wfc"].astype(jnp.bfloat16)
    wfcp = params["wfcp"].astype(jnp.bfloat16)

    ln1w = params["ln1w"].reshape(1, C).astype(jnp.float32)
    ln2w = params["ln2w"].reshape(1, C).astype(jnp.float32)
    # tile RoPE tables across heads -> (T, C//2), matching the [reals|imags] layout
    cosT = jnp.tile(cos_half.astype(jnp.float32), (1, n_head))
    sinT = jnp.tile(sin_half.astype(jnp.float32), (1, n_head))

    # MLP hidden chunk: full hidden if small, otherwise halve until <= 2048
    mlp_chunk = 4 * C
    while mlp_chunk > 2048:
        mlp_chunk //= 2
    assert (4 * C) % mlp_chunk == 0

    kernel = functools.partial(gpt2_rope_block_kernel, n_head=n_head, head_dim=D,
                               mlp_chunk=mlp_chunk)
    return pl.pallas_call(
        kernel,
        out_shape=jax.ShapeDtypeStruct((B, T, C), jnp.float32),
        grid_spec=pltpu.PrefetchScalarGridSpec(
            num_scalar_prefetch=0,
            grid=(B,),
            in_specs=[
                pl.BlockSpec((1, T, C), lambda b: (b, 0, 0)),       # x
                pl.BlockSpec((1, C), lambda b: (0, 0)),             # ln1 weight
                pl.BlockSpec((1, C), lambda b: (0, 0)),             # ln2 weight
                pl.BlockSpec((C, 3 * C), lambda b: (0, 0)),         # W_attn (bf16, permuted)
                pl.BlockSpec((C, C), lambda b: (0, 0)),             # W_proj (bf16)
                pl.BlockSpec((C, 4 * C), lambda b: (0, 0)),         # W_fc   (bf16)
                pl.BlockSpec((4 * C, C), lambda b: (0, 0)),         # W_fc_proj (bf16)
                pl.BlockSpec((T, C // 2), lambda b: (0, 0)),        # cos (tiled)
                pl.BlockSpec((T, C // 2), lambda b: (0, 0)),        # sin (tiled)
            ],
            out_specs=pl.BlockSpec((1, T, C), lambda b: (b, 0, 0)),
        ),
        compiler_params=pltpu.CompilerParams(
            dimension_semantics=("parallel",),
            vmem_limit_bytes=64 * 1024 * 1024,
        ),
    )(x, ln1w, ln2w, wattn_p, wproj, wfc, wfcp, cosT, sinT)


def ref_block(x, p, cos_half, sin_half, n_head):
    """Pure-JAX f32 mirror of the PyTorch Block forward (eval mode, dropout off)."""
    B, T, C = x.shape
    D = C // n_head

    def ln(v, w):
        mu = v.mean(-1, keepdims=True)
        var = ((v - mu) ** 2).mean(-1, keepdims=True)
        return (v - mu) / jnp.sqrt(var + 1e-5) * w

    h = ln(x, p["ln1w"])
    qkv = h @ p["wattn"]
    q, k, v = jnp.split(qkv, 3, axis=-1)
    q = q.reshape(B, T, n_head, D)
    k = k.reshape(B, T, n_head, D)
    v = v.reshape(B, T, n_head, D)

    def rope(t):
        tr = t.reshape(B, T, n_head, D // 2, 2)
        re, im = tr[..., 0], tr[..., 1]
        c = cos_half[None, :, None, :]
        s = sin_half[None, :, None, :]
        return jnp.stack([re * c - im * s, re * s + im * c], axis=-1).reshape(B, T, n_head, D)

    q, k = rope(q), rope(k)
    q = q.transpose(0, 2, 1, 3)
    k = k.transpose(0, 2, 1, 3)
    v = v.transpose(0, 2, 1, 3)
    s = (q @ k.transpose(0, 1, 3, 2)) / math.sqrt(D)
    mask = jnp.tril(jnp.ones((T, T), bool))
    s = jnp.where(mask, s, -jnp.inf)
    a = jax.nn.softmax(s, axis=-1)
    y = (a @ v).transpose(0, 2, 1, 3).reshape(B, T, C)
    x1 = x + y @ p["wproj"]

    h2 = ln(x1, p["ln2w"])
    g = h2 @ p["wfc"]
    g = 0.5 * g * (1.0 + jax.lax.erf(g / jnp.sqrt(2.0)))
    return x1 + g @ p["wfcp"]


if __name__ == "__main__":
    # small config consistent with the module: B=2, T=8, n_embed=32, n_head=4
    B, T, C, H = 2, 8, 32, 4
    D = C // H

    key = jax.random.PRNGKey(0)
    kx, k1, k2, k3, k4 = jax.random.split(key, 5)

    x = jax.random.normal(kx, (B, T, C), dtype=jnp.float32)
    params = {
        # LayerNorm weights init to ones (PyTorch default, bias=False)
        "ln1w": jnp.ones((C,), jnp.float32),
        "ln2w": jnp.ones((C,), jnp.float32),
        # Linear weights (no bias), stored transposed as (in, out)
        "wattn": 0.02 * jax.random.normal(k1, (C, 3 * C), dtype=jnp.float32),
        "wproj": 0.02 * jax.random.normal(k2, (C, C), dtype=jnp.float32),
        "wfc":   0.02 * jax.random.normal(k3, (C, 4 * C), dtype=jnp.float32),
        "wfcp":  0.02 * jax.random.normal(k4, (4 * C, C), dtype=jnp.float32),
    }

    # RoPE tables: freqs_cis = exp(i * t * theta^{-2j/D}),  j = 0..D/2-1
    theta = 10000.0
    inv_freq = 1.0 / (theta ** (jnp.arange(0, D, 2, dtype=jnp.float32) / D))   # (D/2,)
    angles = jnp.arange(T, dtype=jnp.float32)[:, None] * inv_freq[None, :]     # (T, D/2)
    cos_half = jnp.cos(angles)
    sin_half = jnp.sin(angles)

    out = gpt2_block_pallas(x, params, cos_half, sin_half, H)
    out = jax.block_until_ready(out)

    ref = ref_block(x, params, cos_half, sin_half, H)
    ref = jax.block_until_ready(ref)

    assert out.shape == (B, T, C)
    assert np.allclose(np.asarray(out), np.asarray(ref), atol=1e-2, rtol=1e-2), \
        "Pallas output mismatch vs reference"
    print("KERNEL_OK")
</pallas_src>

<mosaic_0001>
module attributes {stable_mosaic.version = 11 : i64} {
  func.func @gpt2_rope_block_kernel(%arg0: i32, %arg1: memref<1x8x32xf32, #tpu.memory_space<vmem>>, %arg2: memref<1x32xf32, #tpu.memory_space<vmem>>, %arg3: memref<1x32xf32, #tpu.memory_space<vmem>>, %arg4: memref<32x96xbf16, #tpu.memory_space<vmem>>, %arg5: memref<32x32xbf16, #tpu.memory_space<vmem>>, %arg6: memref<32x128xbf16, #tpu.memory_space<vmem>>, %arg7: memref<128x32xbf16, #tpu.memory_space<vmem>>, %arg8: memref<8x16xf32, #tpu.memory_space<vmem>>, %arg9: memref<8x16xf32, #tpu.memory_space<vmem>>, %arg10: memref<1x8x32xf32, #tpu.memory_space<vmem>>) attributes {dimension_semantics = [#tpu.dimension_semantics<parallel>], iteration_bounds = array<i64: 2>, scalar_prefetch = 0 : i64, scratch_operands = 0 : i64, tpu.core_type = #tpu.core_type<tc>, window_params = [{transform_indices = @transform_0, window_bounds = array<i64: 1, 8, 32>}, {pipeline_mode = #tpu.pipeline_mode<synchronous>, transform_indices = @transform_1, window_bounds = array<i64: 1, 32>}, {pipeline_mode = #tpu.pipeline_mode<synchronous>, transform_indices = @transform_2, window_bounds = array<i64: 1, 32>}, {pipeline_mode = #tpu.pipeline_mode<synchronous>, transform_indices = @transform_3, window_bounds = array<i64: 32, 96>}, {pipeline_mode = #tpu.pipeline_mode<synchronous>, transform_indices = @transform_4, window_bounds = array<i64: 32, 32>}, {pipeline_mode = #tpu.pipeline_mode<synchronous>, transform_indices = @transform_5, window_bounds = array<i64: 32, 128>}, {pipeline_mode = #tpu.pipeline_mode<synchronous>, transform_indices = @transform_6, window_bounds = array<i64: 128, 32>}, {pipeline_mode = #tpu.pipeline_mode<synchronous>, transform_indices = @transform_7, window_bounds = array<i64: 8, 16>}, {pipeline_mode = #tpu.pipeline_mode<synchronous>, transform_indices = @transform_8, window_bounds = array<i64: 8, 16>}, {transform_indices = @transform_9, window_bounds = array<i64: 1, 8, 32>}]} {
    %c0 = arith.constant 0 : index
    %c0_0 = arith.constant 0 : index
    %c0_1 = arith.constant 0 : index
    %0 = vector.load %arg1[%c0, %c0_0, %c0_1] : memref<1x8x32xf32, #tpu.memory_space<vmem>>, vector<1x8x32xf32>
    %1 = vector.shape_cast %0 : vector<1x8x32xf32> to vector<8x32xf32>
    %c0_2 = arith.constant 0 : index
    %c0_3 = arith.constant 0 : index
    %2 = vector.load %arg2[%c0_2, %c0_3] : memref<1x32xf32, #tpu.memory_space<vmem>>, vector<1x32xf32>
    %c0_4 = arith.constant 0 : index
    %c0_5 = arith.constant 0 : index
    %3 = vector.load %arg3[%c0_4, %c0_5] : memref<1x32xf32, #tpu.memory_space<vmem>>, vector<1x32xf32>
    %c0_6 = arith.constant 0 : index
    %c0_7 = arith.constant 0 : index
    %4 = vector.load %arg8[%c0_6, %c0_7] : memref<8x16xf32, #tpu.memory_space<vmem>>, vector<8x16xf32>
    %c0_8 = arith.constant 0 : index
    %c0_9 = arith.constant 0 : index
    %5 = vector.load %arg9[%c0_8, %c0_9] : memref<8x16xf32, #tpu.memory_space<vmem>>, vector<8x16xf32>
    %cst = arith.constant dense<0.000000e+00> : vector<8xf32>
    %6 = vector.multi_reduction <add>, %1, %cst [1] : vector<8x32xf32> to vector<8xf32>
    %7 = vector.shape_cast %6 : vector<8xf32> to vector<8x1xf32>
    %cst_10 = arith.constant 3.200000e+01 : f32
    %8 = vector.broadcast %cst_10 : f32 to vector<8x1xf32>
    %9 = arith.divf %7, %8 : vector<8x1xf32>
    %10 = vector.broadcast %9 : vector<8x1xf32> to vector<8x32xf32>
    %11 = arith.subf %1, %10 : vector<8x32xf32>
    %12 = arith.mulf %11, %11 : vector<8x32xf32>
    %cst_11 = arith.constant dense<0.000000e+00> : vector<8xf32>
    %13 = vector.multi_reduction <add>, %12, %cst_11 [1] : vector<8x32xf32> to vector<8xf32>
    %14 = vector.shape_cast %13 : vector<8xf32> to vector<8x1xf32>
    %cst_12 = arith.constant 3.200000e+01 : f32
    %15 = vector.broadcast %cst_12 : f32 to vector<8x1xf32>
    %16 = arith.divf %14, %15 : vector<8x1xf32>
    %cst_13 = arith.constant 9.99999974E-6 : f32
    %17 = vector.broadcast %cst_13 : f32 to vector<8x1xf32>
    %18 = arith.addf %16, %17 : vector<8x1xf32>
    %19 = math.rsqrt %18 : vector<8x1xf32>
    %20 = vector.broadcast %19 : vector<8x1xf32> to vector<8x32xf32>
    %21 = arith.mulf %11, %20 : vector<8x32xf32>
    %22 = vector.broadcast %2 : vector<1x32xf32> to vector<8x32xf32>
    %23 = arith.mulf %21, %22 : vector<8x32xf32>
    %24 = arith.truncf %23 : vector<8x32xf32> to vector<8x32xbf16>
    %c0_14 = arith.constant 0 : index
    %c0_15 = arith.constant 0 : index
    %25 = vector.load %arg4[%c0_14, %c0_15] : memref<32x96xbf16, #tpu.memory_space<vmem>>, vector<32x96xbf16>
    %cst_16 = arith.constant dense<0.000000e+00> : vector<8x96xf32>
    %26 = tpu.matmul %24, %25, %cst_16 {dimension_numbers = #tpu.dot_dimension_numbers<[1], [0], [0], [1], [0, 0, 1, 1], [], []>} : vector<8x32xbf16>, vector<32x96xbf16>, vector<8x96xf32> -> vector<8x96xf32>
    %27 = vector.extract_strided_slice %26 {offsets = [0, 0], sizes = [8, 16], strides = [1, 1]} : vector<8x96xf32> to vector<8x16xf32>
    %28 = vector.extract_strided_slice %26 {offsets = [0, 16], sizes = [8, 16], strides = [1, 1]} : vector<8x96xf32> to vector<8x16xf32>
    %29 = vector.extract_strided_slice %26 {offsets = [0, 32], sizes = [8, 16], strides = [1, 1]} : vector<8x96xf32> to vector<8x16xf32>
    %30 = vector.extract_strided_slice %26 {offsets = [0, 48], sizes = [8, 16], strides = [1, 1]} : vector<8x96xf32> to vector<8x16xf32>
    %31 = arith.mulf %27, %4 : vector<8x16xf32>
    %32 = arith.mulf %28, %5 : vector<8x16xf32>
    %33 = arith.subf %31, %32 : vector<8x16xf32>
    %34 = arith.truncf %33 : vector<8x16xf32> to vector<8x16xbf16>
    %35 = arith.mulf %27, %5 : vector<8x16xf32>
    %36 = arith.mulf %28, %4 : vector<8x16xf32>
    %37 = arith.addf %35, %36 : vector<8x16xf32>
    %38 = arith.truncf %37 : vector<8x16xf32> to vector<8x16xbf16>
    %39 = arith.mulf %29, %4 : vector<8x16xf32>
    %40 = arith.mulf %30, %5 : vector<8x16xf32>
    %41 = arith.subf %39, %40 : vector<8x16xf32>
    %42 = arith.truncf %41 : vector<8x16xf32> to vector<8x16xbf16>
    %43 = arith.mulf %29, %5 : vector<8x16xf32>
    %44 = arith.mulf %30, %4 : vector<8x16xf32>
    %45 = arith.addf %43, %44 : vector<8x16xf32>
    %46 = arith.truncf %45 : vector<8x16xf32> to vector<8x16xbf16>
    %47 = tpu.iota {dimensions = array<i32: 0>} : vector<8x8xi32>
    %48 = tpu.iota {dimensions = array<i32: 1>} : vector<8x8xi32>
    %49 = arith.cmpi sge, %47, %48 : vector<8x8xi32>
    %cst_17 = arith.constant 0.000000e+00 : f32
    %50 = vector.broadcast %cst_17 : f32 to vector<8x32xf32>
    %51 = vector.extract_strided_slice %34 {offsets = [0, 0], sizes = [8, 4], strides = [1, 1]} : vector<8x16xbf16> to vector<8x4xbf16>
    %52 = vector.extract_strided_slice %38 {offsets = [0, 0], sizes = [8, 4], strides = [1, 1]} : vector<8x16xbf16> to vector<8x4xbf16>
    %53 = tpu.concatenate %51, %52 in 1 : vector<8x4xbf16>, vector<8x4xbf16> -> vector<8x8xbf16>
    %54 = vector.extract_strided_slice %42 {offsets = [0, 0], sizes = [8, 4], strides = [1, 1]} : vector<8x16xbf16> to vector<8x4xbf16>
    %55 = vector.extract_strided_slice %46 {offsets = [0, 0], sizes = [8, 4], strides = [1, 1]} : vector<8x16xbf16> to vector<8x4xbf16>
    %56 = tpu.concatenate %54, %55 in 1 : vector<8x4xbf16>, vector<8x4xbf16> -> vector<8x8xbf16>
    %57 = vector.extract_strided_slice %26 {offsets = [0, 64], sizes = [8, 8], strides = [1, 1]} : vector<8x96xf32> to vector<8x8xf32>
    %58 = arith.truncf %57 : vector<8x8xf32> to vector<8x8xbf16>
    %cst_18 = arith.constant dense<0.000000e+00> : vector<8x8xf32>
    %59 = tpu.matmul %53, %56, %cst_18 {dimension_numbers = #tpu.dot_dimension_numbers<[1], [1], [0], [0], [0, 0, 1, 0], [], []>} : vector<8x8xbf16>, vector<8x8xbf16>, vector<8x8xf32> -> vector<8x8xf32>
    %cst_19 = arith.constant -1.000000e+30 : f32
    %60 = vector.broadcast %cst_19 : f32 to vector<8x8xf32>
    %61 = arith.select %49, %59, %60 : vector<8x8xi1>, vector<8x8xf32>
    %cst_20 = arith.constant dense<0xFF800000> : vector<8xf32>
    %62 = vector.multi_reduction <maximumf>, %61, %cst_20 [1] : vector<8x8xf32> to vector<8xf32>
    %63 = vector.shape_cast %62 : vector<8xf32> to vector<8x1xf32>
    %64 = vector.broadcast %63 : vector<8x1xf32> to vector<8x8xf32>
    %65 = arith.subf %61, %64 : vector<8x8xf32>
    %66 = math.exp %65 : vector<8x8xf32>
    %cst_21 = arith.constant dense<0.000000e+00> : vector<8xf32>
    %67 = vector.multi_reduction <add>, %66, %cst_21 [1] : vector<8x8xf32> to vector<8xf32>
    %68 = vector.shape_cast %67 : vector<8xf32> to vector<8x1xf32>
    %69 = tpu.reciprocal %68 {approx = true} : vector<8x1xf32> -> vector<8x1xf32>
    %70 = vector.broadcast %69 : vector<8x1xf32> to vector<8x8xf32>
    %71 = arith.mulf %66, %70 : vector<8x8xf32>
    %72 = arith.truncf %71 : vector<8x8xf32> to vector<8x8xbf16>
    %cst_22 = arith.constant dense<0.000000e+00> : vector<8x8xf32>
    %73 = tpu.matmul %72, %58, %cst_22 {dimension_numbers = #tpu.dot_dimension_numbers<[1], [0], [0], [1], [0, 0, 1, 1], [], []>} : vector<8x8xbf16>, vector<8x8xbf16>, vector<8x8xf32> -> vector<8x8xf32>
    %74 = arith.truncf %73 : vector<8x8xf32> to vector<8x8xbf16>
    %c0_23 = arith.constant 0 : index
    %c0_24 = arith.constant 0 : index
    %75 = vector.load %arg5[%c0_23, %c0_24] : memref<32x32xbf16, #tpu.memory_space<vmem>>, vector<8x32xbf16>
    %cst_25 = arith.constant dense<0.000000e+00> : vector<8x32xf32>
    %76 = tpu.matmul %74, %75, %cst_25 {dimension_numbers = #tpu.dot_dimension_numbers<[1], [0], [0], [1], [0, 0, 1, 1], [], []>} : vector<8x8xbf16>, vector<8x32xbf16>, vector<8x32xf32> -> vector<8x32xf32>
    %77 = arith.addf %50, %76 : vector<8x32xf32>
    %78 = vector.extract_strided_slice %34 {offsets = [0, 4], sizes = [8, 4], strides = [1, 1]} : vector<8x16xbf16> to vector<8x4xbf16>
    %79 = vector.extract_strided_slice %38 {offsets = [0, 4], sizes = [8, 4], strides = [1, 1]} : vector<8x16xbf16> to vector<8x4xbf16>
    %80 = tpu.concatenate %78, %79 in 1 : vector<8x4xbf16>, vector<8x4xbf16> -> vector<8x8xbf16>
    %81 = vector.extract_strided_slice %42 {offsets = [0, 4], sizes = [8, 4], strides = [1, 1]} : vector<8x16xbf16> to vector<8x4xbf16>
    %82 = vector.extract_strided_slice %46 {offsets = [0, 4], sizes = [8, 4], strides = [1, 1]} : vector<8x16xbf16> to vector<8x4xbf16>
    %83 = tpu.concatenate %81, %82 in 1 : vector<8x4xbf16>, vector<8x4xbf16> -> vector<8x8xbf16>
    %84 = vector.extract_strided_slice %26 {offsets = [0, 72], sizes = [8, 8], strides = [1, 1]} : vector<8x96xf32> to vector<8x8xf32>
    %85 = arith.truncf %84 : vector<8x8xf32> to vector<8x8xbf16>
    %cst_26 = arith.constant dense<0.000000e+00> : vector<8x8xf32>
    %86 = tpu.matmul %80, %83, %cst_26 {dimension_numbers = #tpu.dot_dimension_numbers<[1], [1], [0], [0], [0, 0, 1, 0], [], []>} : vector<8x8xbf16>, vector<8x8xbf16>, vector<8x8xf32> -> vector<8x8xf32>
    %cst_27 = arith.constant -1.000000e+30 : f32
    %87 = vector.broadcast %cst_27 : f32 to vector<8x8xf32>
    %88 = arith.select %49, %86, %87 : vector<8x8xi1>, vector<8x8xf32>
    %cst_28 = arith.constant dense<0xFF800000> : vector<8xf32>
    %89 = vector.multi_reduction <maximumf>, %88, %cst_28 [1] : vector<8x8xf32> to vector<8xf32>
    %90 = vector.shape_cast %89 : vector<8xf32> to vector<8x1xf32>
    %91 = vector.broadcast %90 : vector<8x1xf32> to vector<8x8xf32>
    %92 = arith.subf %88, %91 : vector<8x8xf32>
    %93 = math.exp %92 : vector<8x8xf32>
    %cst_29 = arith.constant dense<0.000000e+00> : vector<8xf32>
    %94 = vector.multi_reduction <add>, %93, %cst_29 [1] : vector<8x8xf32> to vector<8xf32>
    %95 = vector.shape_cast %94 : vector<8xf32> to vector<8x1xf32>
    %96 = tpu.reciprocal %95 {approx = true} : vector<8x1xf32> -> vector<8x1xf32>
    %97 = vector.broadcast %96 : vector<8x1xf32> to vector<8x8xf32>
    %98 = arith.mulf %93, %97 : vector<8x8xf32>
    %99 = arith.truncf %98 : vector<8x8xf32> to vector<8x8xbf16>
    %cst_30 = arith.constant dense<0.000000e+00> : vector<8x8xf32>
    %100 = tpu.matmul %99, %85, %cst_30 {dimension_numbers = #tpu.dot_dimension_numbers<[1], [0], [0], [1], [0, 0, 1, 1], [], []>} : vector<8x8xbf16>, vector<8x8xbf16>, vector<8x8xf32> -> vector<8x8xf32>
    %101 = arith.truncf %100 : vector<8x8xf32> to vector<8x8xbf16>
    %c8 = arith.constant 8 : index
    %c0_31 = arith.constant 0 : index
    %102 = vector.load %arg5[%c8, %c0_31] : memref<32x32xbf16, #tpu.memory_space<vmem>>, vector<8x32xbf16>
    %cst_32 = arith.constant dense<0.000000e+00> : vector<8x32xf32>
    %103 = tpu.matmul %101, %102, %cst_32 {dimension_numbers = #tpu.dot_dimension_numbers<[1], [0], [0], [1], [0, 0, 1, 1], [], []>} : vector<8x8xbf16>, vector<8x32xbf16>, vector<8x32xf32> -> vector<8x32xf32>
    %104 = arith.addf %77, %103 : vector<8x32xf32>
    %105 = vector.extract_strided_slice %34 {offsets = [0, 8], sizes = [8, 4], strides = [1, 1]} : vector<8x16xbf16> to vector<8x4xbf16>
    %106 = vector.extract_strided_slice %38 {offsets = [0, 8], sizes = [8, 4], strides = [1, 1]} : vector<8x16xbf16> to vector<8x4xbf16>
    %107 = tpu.concatenate %105, %106 in 1 : vector<8x4xbf16>, vector<8x4xbf16> -> vector<8x8xbf16>
    %108 = vector.extract_strided_slice %42 {offsets = [0, 8], sizes = [8, 4], strides = [1, 1]} : vector<8x16xbf16> to vector<8x4xbf16>
    %109 = vector.extract_strided_slice %46 {offsets = [0, 8], sizes = [8, 4], strides = [1, 1]} : vector<8x16xbf16> to vector<8x4xbf16>
    %110 = tpu.concatenate %108, %109 in 1 : vector<8x4xbf16>, vector<8x4xbf16> -> vector<8x8xbf16>
    %111 = vector.extract_strided_slice %26 {offsets = [0, 80], sizes = [8, 8], strides = [1, 1]} : vector<8x96xf32> to vector<8x8xf32>
    %112 = arith.truncf %111 : vector<8x8xf32> to vector<8x8xbf16>
    %cst_33 = arith.constant dense<0.000000e+00> : vector<8x8xf32>
    %113 = tpu.matmul %107, %110, %cst_33 {dimension_numbers = #tpu.dot_dimension_numbers<[1], [1], [0], [0], [0, 0, 1, 0], [], []>} : vector<8x8xbf16>, vector<8x8xbf16>, vector<8x8xf32> -> vector<8x8xf32>
    %cst_34 = arith.constant -1.000000e+30 : f32
    %114 = vector.broadcast %cst_34 : f32 to vector<8x8xf32>
    %115 = arith.select %49, %113, %114 : vector<8x8xi1>, vector<8x8xf32>
    %cst_35 = arith.constant dense<0xFF800000> : vector<8xf32>
    %116 = vector.multi_reduction <maximumf>, %115, %cst_35 [1] : vector<8x8xf32> to vector<8xf32>
    %117 = vector.shape_cast %116 : vector<8xf32> to vector<8x1xf32>
    %118 = vector.broadcast %117 : vector<8x1xf32> to vector<8x8xf32>
    %119 = arith.subf %115, %118 : vector<8x8xf32>
    %120 = math.exp %119 : vector<8x8xf32>
    %cst_36 = arith.constant dense<0.000000e+00> : vector<8xf32>
    %121 = vector.multi_reduction <add>, %120, %cst_36 [1] : vector<8x8xf32> to vector<8xf32>
    %122 = vector.shape_cast %121 : vector<8xf32> to vector<8x1xf32>
    %123 = tpu.reciprocal %122 {approx = true} : vector<8x1xf32> -> vector<8x1xf32>
    %124 = vector.broadcast %123 : vector<8x1xf32> to vector<8x8xf32>
    %125 = arith.mulf %120, %124 : vector<8x8xf32>
    %126 = arith.truncf %125 : vector<8x8xf32> to vector<8x8xbf16>
    %cst_37 = arith.constant dense<0.000000e+00> : vector<8x8xf32>
    %127 = tpu.matmul %126, %112, %cst_37 {dimension_numbers = #tpu.dot_dimension_numbers<[1], [0], [0], [1], [0, 0, 1, 1], [], []>} : vector<8x8xbf16>, vector<8x8xbf16>, vector<8x8xf32> -> vector<8x8xf32>
    %128 = arith.truncf %127 : vector<8x8xf32> to vector<8x8xbf16>
    %c16 = arith.constant 16 : index
    %c0_38 = arith.constant 0 : index
    %129 = vector.load %arg5[%c16, %c0_38] : memref<32x32xbf16, #tpu.memory_space<vmem>>, vector<8x32xbf16>
    %cst_39 = arith.constant dense<0.000000e+00> : vector<8x32xf32>
    %130 = tpu.matmul %128, %129, %cst_39 {dimension_numbers = #tpu.dot_dimension_numbers<[1], [0], [0], [1], [0, 0, 1, 1], [], []>} : vector<8x8xbf16>, vector<8x32xbf16>, vector<8x32xf32> -> vector<8x32xf32>
    %131 = arith.addf %104, %130 : vector<8x32xf32>
    %132 = vector.extract_strided_slice %34 {offsets = [0, 12], sizes = [8, 4], strides = [1, 1]} : vector<8x16xbf16> to vector<8x4xbf16>
    %133 = vector.extract_strided_slice %38 {offsets = [0, 12], sizes = [8, 4], strides = [1, 1]} : vector<8x16xbf16> to vector<8x4xbf16>
    %134 = tpu.concatenate %132, %133 in 1 : vector<8x4xbf16>, vector<8x4xbf16> -> vector<8x8xbf16>
    %135 = vector.extract_strided_slice %42 {offsets = [0, 12], sizes = [8, 4], strides = [1, 1]} : vector<8x16xbf16> to vector<8x4xbf16>
    %136 = vector.extract_strided_slice %46 {offsets = [0, 12], sizes = [8, 4], strides = [1, 1]} : vector<8x16xbf16> to vector<8x4xbf16>
    %137 = tpu.concatenate %135, %136 in 1 : vector<8x4xbf16>, vector<8x4xbf16> -> vector<8x8xbf16>
    %138 = vector.extract_strided_slice %26 {offsets = [0, 88], sizes = [8, 8], strides = [1, 1]} : vector<8x96xf32> to vector<8x8xf32>
    %139 = arith.truncf %138 : vector<8x8xf32> to vector<8x8xbf16>
    %cst_40 = arith.constant dense<0.000000e+00> : vector<8x8xf32>
    %140 = tpu.matmul %134, %137, %cst_40 {dimension_numbers = #tpu.dot_dimension_numbers<[1], [1], [0], [0], [0, 0, 1, 0], [], []>} : vector<8x8xbf16>, vector<8x8xbf16>, vector<8x8xf32> -> vector<8x8xf32>
    %cst_41 = arith.constant -1.000000e+30 : f32
    %141 = vector.broadcast %cst_41 : f32 to vector<8x8xf32>
    %142 = arith.select %49, %140, %141 : vector<8x8xi1>, vector<8x8xf32>
    %cst_42 = arith.constant dense<0xFF800000> : vector<8xf32>
    %143 = vector.multi_reduction <maximumf>, %142, %cst_42 [1] : vector<8x8xf32> to vector<8xf32>
    %144 = vector.shape_cast %143 : vector<8xf32> to vector<8x1xf32>
    %145 = vector.broadcast %144 : vector<8x1xf32> to vector<8x8xf32>
    %146 = arith.subf %142, %145 : vector<8x8xf32>
    %147 = math.exp %146 : vector<8x8xf32>
    %cst_43 = arith.constant dense<0.000000e+00> : vector<8xf32>
    %148 = vector.multi_reduction <add>, %147, %cst_43 [1] : vector<8x8xf32> to vector<8xf32>
    %149 = vector.shape_cast %148 : vector<8xf32> to vector<8x1xf32>
    %150 = tpu.reciprocal %149 {approx = true} : vector<8x1xf32> -> vector<8x1xf32>
    %151 = vector.broadcast %150 : vector<8x1xf32> to vector<8x8xf32>
    %152 = arith.mulf %147, %151 : vector<8x8xf32>
    %153 = arith.truncf %152 : vector<8x8xf32> to vector<8x8xbf16>
    %cst_44 = arith.constant dense<0.000000e+00> : vector<8x8xf32>
    %154 = tpu.matmul %153, %139, %cst_44 {dimension_numbers = #tpu.dot_dimension_numbers<[1], [0], [0], [1], [0, 0, 1, 1], [], []>} : vector<8x8xbf16>, vector<8x8xbf16>, vector<8x8xf32> -> vector<8x8xf32>
    %155 = arith.truncf %154 : vector<8x8xf32> to vector<8x8xbf16>
    %c24 = arith.constant 24 : index
    %c0_45 = arith.constant 0 : index
    %156 = vector.load %arg5[%c24, %c0_45] : memref<32x32xbf16, #tpu.memory_space<vmem>>, vector<8x32xbf16>
    %cst_46 = arith.constant dense<0.000000e+00> : vector<8x32xf32>
    %157 = tpu.matmul %155, %156, %cst_46 {dimension_numbers = #tpu.dot_dimension_numbers<[1], [0], [0], [1], [0, 0, 1, 1], [], []>} : vector<8x8xbf16>, vector<8x32xbf16>, vector<8x32xf32> -> vector<8x32xf32>
    %158 = arith.addf %131, %157 : vector<8x32xf32>
    %159 = arith.addf %1, %158 : vector<8x32xf32>
    %cst_47 = arith.constant dense<0.000000e+00> : vector<8xf32>
    %160 = vector.multi_reduction <add>, %159, %cst_47 [1] : vector<8x32xf32> to vector<8xf32>
    %161 = vector.shape_cast %160 : vector<8xf32> to vector<8x1xf32>
    %cst_48 = arith.constant 3.200000e+01 : f32
    %162 = vector.broadcast %cst_48 : f32 to vector<8x1xf32>
    %163 = arith.divf %161, %162 : vector<8x1xf32>
    %164 = vector.broadcast %163 : vector<8x1xf32> to vector<8x32xf32>
    %165 = arith.subf %159, %164 : vector<8x32xf32>
    %166 = arith.mulf %165, %165 : vector<8x32xf32>
    %cst_49 = arith.constant dense<0.000000e+00> : vector<8xf32>
    %167 = vector.multi_reduction <add>, %166, %cst_49 [1] : vector<8x32xf32> to vector<8xf32>
    %168 = vector.shape_cast %167 : vector<8xf32> to vector<8x1xf32>
    %cst_50 = arith.constant 3.200000e+01 : f32
    %169 = vector.broadcast %cst_50 : f32 to vector<8x1xf32>
    %170 = arith.divf %168, %169 : vector<8x1xf32>
    %cst_51 = arith.constant 9.99999974E-6 : f32
    %171 = vector.broadcast %cst_51 : f32 to vector<8x1xf32>
    %172 = arith.addf %170, %171 : vector<8x1xf32>
    %173 = math.rsqrt %172 : vector<8x1xf32>
    %174 = vector.broadcast %173 : vector<8x1xf32> to vector<8x32xf32>
    %175 = arith.mulf %165, %174 : vector<8x32xf32>
    %176 = vector.broadcast %3 : vector<1x32xf32> to vector<8x32xf32>
    %177 = arith.mulf %175, %176 : vector<8x32xf32>
    %178 = arith.truncf %177 : vector<8x32xf32> to vector<8x32xbf16>
    %cst_52 = arith.constant 0.000000e+00 : f32
    %179 = vector.broadcast %cst_52 : f32 to vector<8x32xf32>
    %c0_53 = arith.constant 0 : index
    %c0_54 = arith.constant 0 : index
    %180 = vector.load %arg6[%c0_53, %c0_54] : memref<32x128xbf16, #tpu.memory_space<vmem>>, vector<32x128xbf16>
    %cst_55 = arith.constant dense<0.000000e+00> : vector<8x128xf32>
    %181 = tpu.matmul %178, %180, %cst_55 {dimension_numbers = #tpu.dot_dimension_numbers<[1], [0], [0], [1], [0, 0, 1, 1], [], []>} : vector<8x32xbf16>, vector<32x128xbf16>, vector<8x128xf32> -> vector<8x128xf32>
    %cst_56 = arith.constant 5.000000e-01 : f32
    %182 = vector.broadcast %cst_56 : f32 to vector<8x128xf32>
    %183 = arith.mulf %182, %181 : vector<8x128xf32>
    %cst_57 = arith.constant 4.471500e-02 : f32
    %184 = vector.broadcast %cst_57 : f32 to vector<8x128xf32>
    %185 = arith.mulf %184, %181 : vector<8x128xf32>
    %186 = arith.mulf %185, %181 : vector<8x128xf32>
    %187 = arith.mulf %186, %181 : vector<8x128xf32>
    %188 = arith.addf %181, %187 : vector<8x128xf32>
    %cst_58 = arith.constant 0.797884583 : f32
    %189 = vector.broadcast %cst_58 : f32 to vector<8x128xf32>
    %190 = arith.mulf %189, %188 : vector<8x128xf32>
    %191 = math.tanh %190 : vector<8x128xf32>
    %cst_59 = arith.constant 1.000000e+00 : f32
    %192 = vector.broadcast %cst_59 : f32 to vector<8x128xf32>
    %193 = arith.addf %192, %191 : vector<8x128xf32>
    %194 = arith.mulf %183, %193 : vector<8x128xf32>
    %195 = arith.truncf %194 : vector<8x128xf32> to vector<8x128xbf16>
    %c0_60 = arith.constant 0 : index
    %c0_61 = arith.constant 0 : index
    %196 = vector.load %arg7[%c0_60, %c0_61] : memref<128x32xbf16, #tpu.memory_space<vmem>>, vector<128x32xbf16>
    %cst_62 = arith.constant dense<0.000000e+00> : vector<8x32xf32>
    %197 = tpu.matmul %195, %196, %cst_62 {dimension_numbers = #tpu.dot_dimension_numbers<[1], [0], [0], [1], [0, 0, 1, 1], [], []>} : vector<8x128xbf16>, vector<128x32xbf16>, vector<8x32xf32> -> vector<8x32xf32>
    %198 = arith.addf %179, %197 : vector<8x32xf32>
    %199 = arith.addf %159, %198 : vector<8x32xf32>
    %c0_63 = arith.constant 0 : index
    %c0_64 = arith.constant 0 : index
    %c0_65 = arith.constant 0 : index
    %200 = vector.load %arg10[%c0_63, %c0_64, %c0_65] : memref<1x8x32xf32, #tpu.memory_space<vmem>>, vector<1x8x32xf32>
    %201 = vector.shape_cast %200 : vector<1x8x32xf32> to vector<8x32xf32>
    %202 = vector.shape_cast %199 : vector<8x32xf32> to vector<1x8x32xf32>
    tpu.vector_store %arg10[%c0_63, %c0_64, %c0_65], %202 {strides = array<i32>} : memref<1x8x32xf32, #tpu.memory_space<vmem>>, vector<1x8x32xf32>,
    return
  }
  func.func @transform_0(%arg0: i32) -> (i32, i32, i32) {
    %c0_i32 = arith.constant 0 : i32
    %c0_i32_0 = arith.constant 0 : i32
    %c0_i32_1 = arith.constant 0 : i32
    return %arg0, %c0_i32, %c0_i32_0 : i32, i32, i32
  }
  func.func @transform_1(%arg0: i32) -> (i32, i32) {
    %c0_i32 = arith.constant 0 : i32
    %c0_i32_0 = arith.constant 0 : i32
    %c0_i32_1 = arith.constant 0 : i32
    return %c0_i32, %c0_i32_0 : i32, i32
  }
  func.func @transform_2(%arg0: i32) -> (i32, i32) {
    %c0_i32 = arith.constant 0 : i32
    %c0_i32_0 = arith.constant 0 : i32
    %c0_i32_1 = arith.constant 0 : i32
    return %c0_i32, %c0_i32_0 : i32, i32
  }
  func.func @transform_3(%arg0: i32) -> (i32, i32) {
    %c0_i32 = arith.constant 0 : i32
    %c0_i32_0 = arith.constant 0 : i32
    %c0_i32_1 = arith.constant 0 : i32
    return %c0_i32, %c0_i32_0 : i32, i32
  }
  func.func @transform_4(%arg0: i32) -> (i32, i32) {
    %c0_i32 = arith.constant 0 : i32
    %c0_i32_0 = arith.constant 0 : i32
    %c0_i32_1 = arith.constant 0 : i32
    return %c0_i32, %c0_i32_0 : i32, i32
  }
  func.func @transform_5(%arg0: i32) -> (i32, i32) {
    %c0_i32 = arith.constant 0 : i32
    %c0_i32_0 = arith.constant 0 : i32
    %c0_i32_1 = arith.constant 0 : i32
    return %c0_i32, %c0_i32_0 : i32, i32
  }
  func.func @transform_6(%arg0: i32) -> (i32, i32) {
    %c0_i32 = arith.constant 0 : i32
    %c0_i32_0 = arith.constant 0 : i32
    %c0_i32_1 = arith.constant 0 : i32
    return %c0_i32, %c0_i32_0 : i32, i32
  }
  func.func @transform_7(%arg0: i32) -> (i32, i32) {
    %c0_i32 = arith.constant 0 : i32
    %c0_i32_0 = arith.constant 0 : i32
    %c0_i32_1 = arith.constant 0 : i32
    return %c0_i32, %c0_i32_0 : i32, i32
  }
  func.func @transform_8(%arg0: i32) -> (i32, i32) {
    %c0_i32 = arith.constant 0 : i32
    %c0_i32_0 = arith.constant 0 : i32
    %c0_i32_1 = arith.constant 0 : i32
    return %c0_i32, %c0_i32_0 : i32, i32
  }
  func.func @transform_9(%arg0: i32) -> (i32, i32, i32) {
    %c0_i32 = arith.constant 0 : i32
    %c0_i32_0 = arith.constant 0 : i32
    %c0_i32_1 = arith.constant 0 : i32
    return %arg0, %c0_i32, %c0_i32_0 : i32, i32, i32
  }
}

</mosaic_0001>

<bundles_post_ra>
// kernel: tpu_custom_call.1
= control target key start
LH: loop header
LB: loop body
LE: loop exit
PB: predicated region body
PF: predicated region fallthrough
CT: control target
= control target key end

     0   :  { %s3005_s0 = inlined_call_operand.hbm [shape: f32[2,8,32], index: 0, kind: input, shape index: {}]   ;;  %s3006_s1 = inlined_call_operand.hbm [shape: f32[1,32], index: 1, kind: input, shape index: {}]   ;;  %s3007_s2 = inlined_call_operand.hbm [shape: f32[1,32], index: 2, kind: input, shape index: {}]   ;;  %s3008_s3 = inlined_call_operand.hbm [shape: bf16[32,96], index: 3, kind: input, shape index: {}]   ;;  %s3009_s4 = inlined_call_operand.hbm [shape: bf16[32,32], index: 4, kind: input, shape index: {}]   ;;  %s3010_s5 = inlined_call_operand.hbm [shape: bf16[32,128], index: 5, kind: input, shape index: {}]   ;;  %s3011_s6 = inlined_call_operand.hbm [shape: bf16[128,32], index: 6, kind: input, shape index: {}]   ;;  %s3012_s7 = inlined_call_operand.hbm [shape: f32[8,16], index: 7, kind: input, shape index: {}]   ;;  %s3013_s8 = inlined_call_operand.hbm [shape: f32[8,16], index: 8, kind: input, shape index: {}]   ;;  %s3014_s9 = inlined_call_operand.hbm [shape: f32[2,8,32], index: 9, kind: output, shape index: {}]  }
   0x1   :  { %3018 = sst [smem:[#allocation24_spill]] %s3006_s1 }
   0x2   :  { %3019 = sst [smem:[#allocation25_spill]] %s3008_s3 }
   0x3   :  { %14 = vsyncpa [#allocation3], 0 }
   0x4   :  { %16 = vsyncpa [#allocation3 + $0x1], 0 }
   0x5   :  { %17 = vsyncpa [#allocation6], 0 }
   0x6   :  { %18 = vsyncpa [#allocation9], 0 }
   0x7   :  { %19 = vsyncpa [#allocation12], 0 }
   0x8   :  { %20 = vsyncpa [#allocation15], 0 }
   0x9   :  { %21 = vsyncpa [#allocation4], 0 }
   0xa   :  { %23 = vsyncpa [#allocation4 + $0x1], 0  ;;  %s2435_s30 = smov 0   ;;  %s2437_s10 = smov 0  }
   0xb   :  { %s2439_s11 = smov 0   ;;  %s2441_s12 = smov 0  }
   0xc LB: > { %s2355_s13 = smov [#allocation5]   ;;  %s2456_s15 = sadd.s32 4294967295, %s2353_s12   ;;  %s2353_s12 = sphi %s2441_s12, %s3046_s12   ;;  %s2349_s11 = sphi %s2439_s11, %s3045_s11   ;;  %s2345_s10 = sphi %s2437_s10, %s3044_s10   ;;  %s2341_s30 = sphi %s2435_s30, %s3043_s30  }
   0xd   : > { %s267_s14 = sshll.u32 %s2355_s13, 4  ;;  %p1634_p0 = scmp.ge.s32.totalorder %s2353_s12, 1  ;;  %s2461_s14 = int_to_ptr.vmem [resolvable:$true] %s267_s14 }
   0xe   : > { %p3015_p1 = scmp.eq.s32.totalorder %s2456_s15, 0  ;;  %p254_p2 = scmp.lt.s32.totalorder %s2353_s12, 3 }
   0xf   : > { %s2356_s17 = smov [#allocation8]   ;;  %s2357_s20 = smov [#allocation11]  }
  0x10   : > { %p2463_p3 = pnand %p1634_p0, %p254_p2  ;;  %s288_s18 = sshll.u32 %s2356_s17, 4  ;;  %s2470_s18 = int_to_ptr.vmem [resolvable:$true] %s288_s18 }
  0x11   : > { %s314_s21 = sshll.u32 %s2357_s20, 4  ;;  %s3022_s1 = sld [smem:[#allocation24_spill]]  ;;  %s2478_s21 = int_to_ptr.vmem [resolvable:$true] %s314_s21 }
  0x12   : > { %s3020_s16 = scalar_select %p2463_p3, 1, 0 }
  0x13   : > { %p1872_p5 = pneg %p2463_p3 }
  0x15   : > { %p2474_p6 = pnand %p1872_p5, %p3015_p1 }
  0x17   : > { %s2017_s24 = scalar_lea.hbm %s3022_s1, 16  ;;  %p2488_p8 = pneg %p2474_p6 }
  0x18   : > { %p2018_p7 = scmp.ne.s32.totalorder %s3022_s1, %s2017_s24  ;;  %p2024_p11 = scmp.lt.u32.totalorder %s2017_s24, %s3022_s1 }
  0x1a   : > { %p2020_p9 = pnand %p2488_p8, %p2018_p7 }
  0x1c   : > { %p2021_p10 = pneg %p2020_p9 }
  0x1e   : > { %p2026_p12 = pnand %p2024_p11, %p2021_p10 }
  0x20   : > { %2029 = shalt.err (!%p2026_p12)
}
  0x21   : > { %s2030_s13 = scalar_lea.vmem %s2461_s14, 16  ;;  %s2037_s17 = scalar_lea.vmem %s2461_s14, 32 }
  0x22   : > { %p2031_p13 = scmp.ne.s32.totalorder %s2461_s14, %s2030_s13  ;;  %p2038_p5 = scmp.lt.s32.totalorder %s2461_s14, %s2461_s14 }
  0x23   : > { %p2039_p7 = scmp.lt.s32.totalorder %s2037_s17, %s2030_s13 }
  0x24   : > { %p2033_p0 = pnand %p2031_p13, %p2488_p8 }
  0x25   : > { %p2040_p9 = por %p2039_p7, %p2038_p5 }
  0x26   : > { %p2034_p2 = pneg %p2033_p0 }
  0x28   : > { %p2041_p4 = pnand %p2040_p9, %p2034_p2 }
  0x2a   : > { %2044 = shalt.err (!%p2041_p4)
}
  0x2b   : > { %1875 = dma.hbm_to_vmem [thread:$0]  (!%p2474_p6), %s3022_s1, 16, %s2461_s14, [#allocation6]  }
  0x2c   : > { %s3024_s3 = sld [smem:[#allocation25_spill]] }
  0x32   : > { %s2045_s25 = scalar_lea.hbm %s3024_s3, 256 }
  0x33   : > { %p2046_p10 = scmp.ne.s32.totalorder %s3024_s3, %s2045_s25  ;;  %p2052_p4 = scmp.lt.u32.totalorder %s2045_s25, %s3024_s3 }
  0x35   : > { %p2048_p11 = pnand %p2046_p10, %p2488_p8 }
  0x37   : > { %p2049_p12 = pneg %p2048_p11 }
  0x39   : > { %p2054_p13 = pnand %p2052_p4, %p2049_p12 }
  0x3b   : > { %2057 = shalt.err (!%p2054_p13)
}
  0x3c   : > { %s2058_s14 = scalar_lea.vmem %s2470_s18, 256  ;;  %p2066_p7 = scmp.lt.s32.totalorder %s2470_s18, %s2470_s18 }
  0x3d   : > { %p2059_p0 = scmp.ne.s32.totalorder %s2470_s18, %s2058_s14  ;;  %p2067_p9 = scmp.lt.s32.totalorder %s2058_s14, %s2058_s14 }
  0x3f   : > { %p2061_p2 = pnand %p2059_p0, %p2488_p8  ;;  %p2068_p10 = por %p2067_p9, %p2066_p7 }
  0x41   : > { %p2062_p5 = pneg %p2061_p2 }
  0x43   : > { %p2069_p11 = pnand %p2068_p10, %p2062_p5 }
  0x45   : > { %2072 = shalt.err (!%p2069_p11)
}
  0x46   : > { %s2358_s17 = smov 64   ;;  %s2359_s20 = smov 4  }
  0x47   : > { %1881 = dma.hbm_to_vmem [thread:$0]  (!%p2474_p6), %s3024_s3, 256, %s2470_s18, [#allocation9], %s2358_s17, %s2358_s17, %s2359_s20  }
  0x48   : > { %s2073_s26 = scalar_lea.hbm %s3010_s5, 256 }
  0x49   : > { %p2074_p12 = scmp.ne.s32.totalorder %s3010_s5, %s2073_s26  ;;  %p2080_p0 = scmp.lt.u32.totalorder %s2073_s26, %s3010_s5 }
  0x4b   : > { %p2076_p4 = pnand %p2074_p12, %p2488_p8 }
  0x4d   : > { %p2077_p13 = pneg %p2076_p4 }
  0x4f   : > { %p2082_p2 = pnand %p2080_p0, %p2077_p13 }
  0x51   : > { %2085 = shalt.err (!%p2082_p2)
}
  0x52   : > { %s2086_s18 = scalar_lea.vmem %s2478_s21, 256  ;;  %p2094_p10 = scmp.lt.s32.totalorder %s2478_s21, %s2478_s21 }
  0x53   : > { %p2087_p5 = scmp.ne.s32.totalorder %s2478_s21, %s2086_s18  ;;  %p2095_p11 = scmp.lt.s32.totalorder %s2086_s18, %s2086_s18 }
  0x55   : > { %p2089_p7 = pnand %p2087_p5, %p2488_p8  ;;  %p2096_p12 = por %p2095_p11, %p2094_p10 }
  0x57   : > { %p2090_p9 = pneg %p2089_p7 }
  0x59   : > { %p2097_p4 = pnand %p2096_p12, %p2090_p9 }
  0x5b   : > { %2100 = shalt.err (!%p2097_p4)
}
  0x5c   : > { %1887 = dma.hbm_to_vmem [thread:$0]  (!%p2474_p6), %s3010_s5, 256, %s2478_s21, [#allocation12], %s2358_s17, %s2358_s17, %s2359_s20  }
  0x5d   : > { %s2360_s24 = smov [#allocation14]   ;;  %s2361_s26 = smov [#allocation7]  }
  0x5e   : > { %s341_s25 = sshll.u32 %s2360_s24, 4  ;;  %s278_s28 = sshll.u32 %s2361_s26, 4  ;;  %s342_s25 = int_to_ptr.vmem [resolvable:$true] %s341_s25  ;;  %s279_s28 = int_to_ptr.vmem [resolvable:$true] %s278_s28 }
  0x5f   : > { %s2101_s14 = scalar_lea.hbm %s3012_s7, 128 }
  0x60   : > { %p2102_p13 = scmp.ne.s32.totalorder %s3012_s7, %s2101_s14  ;;  %p2108_p5 = scmp.lt.u32.totalorder %s2101_s14, %s3012_s7 }
  0x62   : > { %p2104_p0 = pnand %p2102_p13, %p2488_p8 }
  0x64   : > { %p2105_p2 = pneg %p2104_p0 }
  0x66   : > { %p2110_p7 = pnand %p2108_p5, %p2105_p2 }
  0x68   : > { %2113 = shalt.err (!%p2110_p7)
}
  0x69   : > { %s2114_s21 = scalar_lea.vmem %s342_s25, 128  ;;  %p2122_p12 = scmp.lt.s32.totalorder %s342_s25, %s342_s25 }
  0x6a   : > { %p2115_p9 = scmp.ne.s32.totalorder %s342_s25, %s2114_s21  ;;  %p2123_p4 = scmp.lt.s32.totalorder %s2114_s21, %s2114_s21 }
  0x6c   : > { %p2117_p10 = pnand %p2115_p9, %p2488_p8  ;;  %p2124_p1 = por %p2123_p4, %p2122_p12 }
  0x6e   : > { %p2118_p11 = pneg %p2117_p10 }
  0x70   : > { %p2125_p3 = pnand %p2124_p1, %p2118_p11 }
  0x72   : > { %2128 = shalt.err (!%p2125_p3)
}
  0x73   : > { %1893 = dma.hbm_to_vmem [thread:$0]  (!%p2474_p6), %s3012_s7, 128, %s342_s25, [#allocation15]  }
  0x74   : > { %s2129_s26 = scalar_lea.hbm %s3007_s2, 16 }
  0x75   : > { %p2130_p13 = scmp.ne.s32.totalorder %s3007_s2, %s2129_s26  ;;  %p2136_p3 = scmp.lt.u32.totalorder %s2129_s26, %s3007_s2 }
  0x77   : > { %p2132_p0 = pnand %p2130_p13, %p2488_p8 }
  0x79   : > { %p2133_p1 = pneg %p2132_p0 }
  0x7b   : > { %p2138_p2 = pnand %p2136_p3, %p2133_p1 }
  0x7d   : > { %2141 = shalt.err (!%p2138_p2)
}
  0x7e   : > { %s2142_s22 = scalar_lea.vmem %s279_s28, 16  ;;  %s2149_s25 = scalar_lea.vmem %s279_s28, 32 }
  0x7f   : > { %p2143_p5 = scmp.ne.s32.totalorder %s279_s28, %s2142_s22  ;;  %p2150_p10 = scmp.lt.s32.totalorder %s279_s28, %s279_s28 }
  0x80   : > { %p2151_p11 = scmp.lt.s32.totalorder %s2149_s25, %s2142_s22 }
  0x81   : > { %p2145_p7 = pnand %p2143_p5, %p2488_p8 }
  0x82   : > { %p2152_p12 = por %p2151_p11, %p2150_p10 }
  0x83   : > { %p2146_p9 = pneg %p2145_p7 }
  0x85   : > { %p2153_p4 = pnand %p2152_p12, %p2146_p9 }
  0x87   : > { %2156 = shalt.err (!%p2153_p4)
}
  0x88   : > { %1878 = dma.hbm_to_vmem [thread:$0]  (!%p2474_p6), %s3007_s2, 16, %s279_s28, [#allocation6]  }
  0x89   : > { %s2362_s23 = smov [#allocation10]   ;;  %s2363_s24 = smov [#allocation13]  }
  0x8a   : > { %s301_s3 = sshll.u32 %s2362_s23, 4  ;;  %s327_s26 = sshll.u32 %s2363_s24, 4  ;;  %s302_s3 = int_to_ptr.vmem [resolvable:$true] %s301_s3  ;;  %s328_s26 = int_to_ptr.vmem [resolvable:$true] %s327_s26 }
  0x8b   : > { %s2157_s14 = scalar_lea.hbm %s3009_s4, 256 }
  0x8c   : > { %p2158_p13 = scmp.ne.s32.totalorder %s3009_s4, %s2157_s14  ;;  %p2164_p3 = scmp.lt.u32.totalorder %s2157_s14, %s3009_s4 }
  0x8e   : > { %p2160_p0 = pnand %p2158_p13, %p2488_p8 }
  0x90   : > { %p2161_p1 = pneg %p2160_p0 }
  0x92   : > { %p2166_p2 = pnand %p2164_p3, %p2161_p1 }
  0x94   : > { %2169 = shalt.err (!%p2166_p2)
}
  0x95   : > { %s2170_s28 = scalar_lea.vmem %s302_s3, 256  ;;  %p2178_p10 = scmp.lt.s32.totalorder %s302_s3, %s302_s3 }
  0x96   : > { %p2171_p5 = scmp.ne.s32.totalorder %s302_s3, %s2170_s28  ;;  %p2179_p11 = scmp.lt.s32.totalorder %s2170_s28, %s2170_s28 }
  0x98   : > { %p2173_p7 = pnand %p2171_p5, %p2488_p8  ;;  %p2180_p12 = por %p2179_p11, %p2178_p10 }
  0x9a   : > { %p2174_p9 = pneg %p2173_p7 }
  0x9c   : > { %p2181_p4 = pnand %p2180_p12, %p2174_p9 }
  0x9e   : > { %2184 = shalt.err (!%p2181_p4)
}
  0x9f   : > { %1884 = dma.hbm_to_vmem [thread:$0]  (!%p2474_p6), %s3009_s4, 256, %s302_s3, [#allocation9], %s2358_s17, %s2358_s17, %s2359_s20  }
  0xa0   : > { %s2185_s13 = scalar_lea.hbm %s3011_s6, 1024 }
  0xa1   : > { %p2186_p13 = scmp.ne.s32.totalorder %s3011_s6, %s2185_s13  ;;  %p2192_p3 = scmp.lt.u32.totalorder %s2185_s13, %s3011_s6 }
  0xa3   : > { %p2188_p0 = pnand %p2186_p13, %p2488_p8 }
  0xa5   : > { %p2189_p1 = pneg %p2188_p0 }
  0xa7   : > { %p2194_p2 = pnand %p2192_p3, %p2189_p1 }
  0xa9   : > { %2197 = shalt.err (!%p2194_p2)
}
  0xaa   : > { %s2198_s21 = scalar_lea.vmem %s328_s26, 1024  ;;  %p2206_p10 = scmp.lt.s32.totalorder %s328_s26, %s328_s26 }
  0xab   : > { %p2199_p5 = scmp.ne.s32.totalorder %s328_s26, %s2198_s21  ;;  %p2207_p11 = scmp.lt.s32.totalorder %s2198_s21, %s2198_s21 }
  0xad   : > { %p2201_p7 = pnand %p2199_p5, %p2488_p8  ;;  %p2208_p12 = por %p2207_p11, %p2206_p10 }
  0xaf   : > { %p2202_p9 = pneg %p2201_p7 }
  0xb1   : > { %p2209_p4 = pnand %p2208_p12, %p2202_p9 }
  0xb3   : > { %2212 = shalt.err (!%p2209_p4)
}
  0xb4   : > { %1890 = dma.hbm_to_vmem [thread:$0]  (!%p2474_p6), %s3011_s6, 1024, %s328_s26, [#allocation12], %s2358_s17, %s2358_s17, %s2359_s20  }
  0xb5   : > { %s2364_s1 = smov [#allocation16]   ;;  %s2213_s13 = scalar_lea.hbm %s3013_s8, 128 }
  0xb6   : > { %s352_s23 = sshll.u32 %s2364_s1, 4  ;;  %p2214_p13 = scmp.ne.s32.totalorder %s3013_s8, %s2213_s13  ;;  %s353_s23 = int_to_ptr.vmem [resolvable:$true] %s352_s23 }
  0xb7   : > { %p2220_p3 = scmp.lt.u32.totalorder %s2213_s13, %s3013_s8 }
  0xb8   : > { %p2216_p0 = pnand %p2214_p13, %p2488_p8 }
  0xba   : > { %p2217_p1 = pneg %p2216_p0 }
  0xbc   : > { %p2222_p2 = pnand %p2220_p3, %p2217_p1 }
  0xbe   : > { %2225 = shalt.err (!%p2222_p2)
}
  0xbf   : > { %s2226_s17 = scalar_lea.vmem %s353_s23, 128  ;;  %p2234_p10 = scmp.lt.s32.totalorder %s353_s23, %s353_s23 }
  0xc0   : > { %p2227_p5 = scmp.ne.s32.totalorder %s353_s23, %s2226_s17  ;;  %p2235_p11 = scmp.lt.s32.totalorder %s2226_s17, %s2226_s17 }
  0xc2   : > { %p2229_p7 = pnand %p2227_p5, %p2488_p8  ;;  %p2236_p12 = por %p2235_p11, %p2234_p10 }
  0xc4   : > { %p2230_p9 = pneg %p2229_p7 }
  0xc6   : > { %p2237_p4 = pnand %p2236_p12, %p2230_p9 }
  0xc8   : > { %2240 = shalt.err (!%p2237_p4)
}
  0xc9   : > { %1896 = dma.hbm_to_vmem [thread:$0]  (!%p2474_p6), %s3013_s8, 128, %s353_s23, [#allocation15]  }
  0xca   : > { %s1633_s27 = sadd.s32 4294967294, %s2353_s12   ;;  %s2660_s19 = sadd.s32 1, %s2353_s12  }
  0xcb   : > { %s33_s21 = ssub.s32 %s2353_s12, %s2660_s19  ;;  %s36_s3 = sadd.s32 1, %s2349_s11 }
  0xcc   : > { %p34_p8 = scmp.eq.s32.totalorder %s33_s21, 0  ;;  %p43_p13 = scmp.ne.s32.totalorder %s2349_s11, %s2345_s10 }
  0xcd   : > { %p44_p0 = scmp.eq.s32.totalorder %s2353_s12, 0  ;;  %p49_p1 = scmp.ne.s32.totalorder %s2345_s10, %s2341_s30 }
  0xce   : > { %s2671_s28 = scalar_select %p34_p8, %s2349_s11, %s36_s3  }
  0xcf   : > { %p2673_p3 = por %p44_p0, %p43_p13  ;;  %p3026_p2 = scmp.eq.s32.totalorder %s2456_s15, 0 }
  0xd0   : > { %p241_p5 = scmp.eq.s32.totalorder %s2456_s15, 1  ;;  %p247_p7 = scmp.eq.s32.totalorder %s1633_s27, 1 }
  0xd1   : > { %p2679_p6 = por %p3026_p2, %p49_p1  ;;  %p1913_p9 = scmp.lt.s32.totalorder %s2353_s12, 2 }
  0xd2   : > { %s363_s24 = sand.u32 1, %s2349_s11   ;;  %p2686_p10 = por %p241_p5, %p43_p13 }
  0xd3   : > { %p2690_p11 = por %p247_p7, %p49_p1  ;;  %s1644_s14 = sshll.u32 %s363_s24, 3 }
  0xd4   : > { %s3028_s29 = scalar_select %p2686_p10, 1, 0 }
  0xd5   : > { %s3029_s13 = scalar_select %p2690_p11, 1, 0 }
  0xd6   : > { %s1645_s18 = sshll.u32 %s2353_s12, 7  ;;  %s367_s20 = scalar_lea.vmem [#allocation2], %s1644_s14 }
  0xd7   : > { %s2698_s17 = scalar_lea.hbm %s3005_s0, %s1645_s18  ;;  %s374_s26 = sshll.u32 %s367_s20, 4  ;;  %s2700_s26 = int_to_ptr.vmem [resolvable:$true] %s374_s26 }
  0xd8   : > { %p2704_p12 = pnand %p1913_p9, %p2673_p3  ;;  %s364_s21 = scalar_lea.sflag [#allocation3], %s363_s24 }
  0xd9   : > { %s2241_s3 = scalar_lea.hbm %s2698_s17, 128  ;;  %s2246_s22 = scalar_lea.hbm %s3005_s0, 256 }
  0xda   : > { %p2242_p4 = scmp.ne.s32.totalorder %s2698_s17, %s2241_s3  ;;  %p2243_p8 = pneg %p2704_p12 }
  0xdb   : > { %p2247_p1 = scmp.lt.u32.totalorder %s2698_s17, %s3005_s0  ;;  %p2248_p3 = scmp.lt.u32.totalorder %s2246_s22, %s2241_s3 }
  0xdc   : > { %p2244_p13 = pnand %p2243_p8, %p2242_p4  ;;  %p2250_p5 = scmp.lt.u32.totalorder %s2241_s3, %s2698_s17 }
  0xdd   : > { %p2249_p2 = por %p2248_p3, %p2247_p1 }
  0xde   : > { %p2245_p0 = pneg %p2244_p13 }
  0xdf   : > { %p2251_p7 = por %p2250_p5, %p2249_p2 }
  0xe1   : > { %p2252_p9 = pnand %p2251_p7, %p2245_p0 }
  0xe3   : > { %2255 = shalt.err (!%p2252_p9)
}
  0xe4   : > { %s2256_s24 = scalar_lea.vmem %s2700_s26, 128  ;;  %s2365_s20 = smov [#allocation2]  }
  0xe5   : > { %p2257_p4 = scmp.ne.s32.totalorder %s2700_s26, %s2256_s24  ;;  %s2261_s14 = sshll.u32 %s2365_s20, 4  ;;  %s2262_s14 = int_to_ptr.vmem [resolvable:$false] %s2261_s14 }
  0xe6   : > { %s2263_s18 = scalar_lea.vmem %s2262_s14, 256  ;;  %p2264_p10 = scmp.lt.s32.totalorder %s2700_s26, %s2262_s14 }
  0xe7   : > { %p2259_p13 = pnand %p2257_p4, %p2243_p8  ;;  %p2265_p1 = scmp.lt.s32.totalorder %s2263_s18, %s2256_s24 }
  0xe9   : > { %p2260_p11 = pneg %p2259_p13  ;;  %p2266_p3 = por %p2265_p1, %p2264_p10 }
  0xeb   : > { %p2267_p2 = pnand %p2266_p3, %p2260_p11 }
  0xed   : > { %2270 = shalt.err (!%p2267_p2)
}
  0xee   : > { %1900 = dma.hbm_to_vmem [thread:$0]  (!%p2704_p12), %s2698_s17, 128, %s2700_s26, %s364_s21  }
  0xef   : > { %p3031_p0 = scmp.ne.s32.totalorder %s3020_s16, 0 }
  0xf0   : > { %s2736_s3 = sand.u32 (!%p3031_p0), 1, %s2345_s10  }
  0xf1   : > { %383 = sbr.rel (%p3031_p0) target bundleno = 4601 (0x11f9), region = 56  ;;  %s1647_s22 = sshll.u32 (!%p3031_p0), %s2736_s3, 3 }
  0xf2   : > { %s386_s1 = scalar_lea.sflag (!%p3031_p0), [#allocation3], %s2736_s3  ;;  %s389_s25 = scalar_lea.vmem (!%p3031_p0), [#allocation2], %s1647_s22 }
  0xf8   : > { %2316 = dma.done.wait (%p2679_p6), %s386_s1, 128  }
  0xf9   : > { %2318 = vsyncadd (%p2679_p6), %s386_s1, 4294967168  ;;  %p3032_p10 = scmp.eq.s32.totalorder %s2456_s15, 0 }
  0xfb   : > { %2320 = dma.done.wait (%p3032_p10), [#allocation6], 32   ;;  %p3033_p11 = pmov %p3032_p10 }
  0xfc   : > { %p3034_p12 = pmov %p3032_p10 }
  0xfd   : > { %2322 = vsyncadd (%p3033_p11), [#allocation6], 4294967264 }
  0xfe   : > { %2324 = dma.done.wait (%p3034_p12), [#allocation9], 512   ;;  %p3035_p8 = pmov %p3032_p10 }
 0x100   : > { %2326 = vsyncadd (%p3035_p8), [#allocation9], 4294966784  ;;  %p3036_p5 = pmov %p3035_p8 }
 0x102   : > { %2328 = dma.done.wait (%p3036_p5), [#allocation12], 1280   ;;  %p3037_p7 = pmov %p3036_p5 }
 0x103   : > { %p3038_p6 = pmov %p3036_p5 }
 0x104   : > { %2330 = vsyncadd (%p3037_p7), [#allocation12], 4294966016 }
 0x105   : > { %2332 = dma.done.wait (%p3038_p6), [#allocation15], 256   ;;  %p3039_p9 = pmov %p3036_p5 }
 0x106   : > { %vm462_vm0 = vcmask 261120   ;;  %v2762_v0 = vld [vmem:[%s389_s25] sm:$0xff]  ;;  %v1983_v7 = vld [vmem:[#allocation8] sm:$0xff]   ;;  %v2366_v8 = vmov 0.0   ;;  %vm2367_vm1 = vmmov 0   ;;  %s2368_s16 = smov 48   ;;  %v596_v56 = vlaneseq }
 0x107   : > { %2334 = vsyncadd (%p3039_p9), [#allocation15], 4294967040  ;;  %v463_v1 = vsel %vm462_vm0, %v2762_v0, 0.0  ;;  %1728 = vmatprep.subr.bf16.mxu1 %v2366_v8  ;;  %1732 = vmatprep.mubr.msk.bf16.mxu1 %vm2367_vm1, %v2366_v8  ;;  %v1984_v9 = vld [vmem:[#allocation8 + $0x8] sm:$0xff]   ;;  %v461_v10 = vld [vmem:[#allocation16] sm:$0xff]  ;;  %s2369_s23 = smov 16  }
 0x108   : > { %464 = vadd.xlane.f32.xlu0 %v463_v1  ;;  %1729 = vmatpush3.bf16.msra.mxu1 %v1983_v7  ;;  %v2777_v11 = vld [vmem:[#allocation14] sm:$0xff]  ;;  %s2370_s17 = smov 32   ;;  %v1657_v16 = vld [vmem:[#allocation5] ss:$0 sm:$0xff]  ;;  %s2371_s26 = smov 112   ;;  %vm604_vm2 = vcmask 31744  }
 0x109   : > { %1754 = vmatprep.subr.bf16.mxu0 %v2366_v8  ;;  %1730 = vmatprep.subr.bf16.mxu1 %v2366_v8  ;;  %s2372_s27 = smov 96   ;;  %s2373_s21 = smov 100   ;;  %vm618_vm3 = vcmask 64512   ;;  %v2819_v57 = vshrl.u32 %v596_v56, 7  ;;  %v2821_v58 = vand.u32 127, %v596_v56  ;;  %vm682_vm5 = vcmask 1043456  }
 0x10a   : > { %1756 = vmatprep.mubr.msk.bf16.mxu0 %vm2367_vm1, %v2366_v8  ;;  %572 = vrot.lane.b32.xlu1 %v461_v10, %s2368_s16  ;;  %s2374_s24 = smov 4   ;;  %s2375_s20 = smov 92  }
 0x10b   : > { %vm600_vm4 = vcmp.ge.s32.totalorder %v2819_v57, %v2821_v58  ;;  %s2376_s14 = smov 64   ;;  %s2377_s18 = smov 124  }
 0x10c   : > { %1731 = vmatpush3.bf16.msra.mxu1 %v1984_v9  ;;  %s2378_s1 = smov 56   ;;  %s2379_s25 = smov 88  }
 0x10d   : > { %1736 = vmatprep.subr.bf16.mxu1 %v2366_v8  ;;  %p3040_p13 = scmp.ne.s32.totalorder %s3028_s29, 0 }
 0x10e   : > { %586 = vrot.lane.b32.xlu1 %v2777_v11, %s2368_s16 }
 0x112   : > { %568 = vrot.lane.b32.xlu1 %v2777_v11, %s2370_s17 }
 0x116   : > { %582 = vrot.lane.b32.xlu1 %v461_v10, %s2370_s17  ;;  %s2381_s17 = smov 84  }
 0x17c   : > { %v573_v20 = vpop.permute.xlu1 %572 }
 0x180   : > { %v587_v26 = vpop.permute.xlu1 %586 }
 0x184   : > { %v569_v30 = vpop.permute.xlu1 %568 }
 0x188   : > { %v583_v31 = vpop.permute.xlu1 %582 }
 0x195   : > { %v465_v2 = vpop.xlane.xlu0 %464 }
 0x196   : > { %v467_v3 = vmul.f32 0.03125, %v465_v2 }
 0x198   : > { %v468_v4 = vsub.f32 %v2762_v0, %v467_v3 }
 0x19a   : > { %v469_v5 = vmul.f32 %v468_v4, %v468_v4 }
 0x19c   : > { %v470_v6 = vsel %vm462_vm0, %v469_v5, 0.0 }
 0x19d   : > { %471 = vadd.xlane.f32.xlu0 %v470_v6 }
 0x1b3   : > { %558 = vrot.lane.b32.xlu0 %v2777_v11, %s2369_s23 }
 0x22a   : > { %v472_v12 = vpop.xlane.xlu0 %471 }
 0x22b   : > { %v473_v13 = vmul.f32 0.03125, %v472_v12 }
 0x22d   : > { %v474_v14 = vadd.f32 1e-05, %v473_v13 }
 0x22e   : > { %v559_v28 = vpop.permute.xlu0 %558 }
 0x22f   : > { %1995 = vrsqrt.f32 %v474_v14 }
 0x239   : > { %v1996_v15 = vpop.eup %1995 }
 0x23a   : > { %v476_v17 = vmul.f32 %v1996_v15, %v468_v4 }
 0x23c   : > { %v483_v18 = vmul.f32 %v1657_v16, %v476_v17 }
 0x23e   : > { %v484_v19 = vpack.c.bf16 %v483_v18, %v483_v18 }
 0x240   : > { %1733 = vmatmul.mubr.msk.bf16.vlgmr.msra.gmra.mrb[0].mxu1 %vm462_vm0, %v484_v19 }
 0x241   : > { %1738 = vmatprep.mubr.msk.bf16.mxu1 %vm2367_vm1, %v2366_v8 }
 0x313   : > { %v2786_v21 = vpop.f32.mrb[0].mxu1 }
 0x314   : > { %v1734_v22 = vpop.f32.mrb[1].mxu1  ;;  %v575_v23 = vmul.f32 %v573_v20, %v2786_v21  ;;  %v589_v27 = vmul.f32 %v587_v26, %v2786_v21  ;;  %v561_v29 = vmul.f32 %v559_v28, %v2786_v21  ;;  %v571_v32 = vmul.f32 %v569_v30, %v2786_v21 }
 0x315   : > { %v541_v24 = vpop.f32.mrb[2].mxu1  ;;  %v585_v36 = vmul.f32 %v583_v31, %v2786_v21  ;;  %v556_v42 = vmul.f32 %v2786_v21, %v461_v10  ;;  %v544_v49 = vmul.f32 %v2786_v21, %v2777_v11  ;;  %v2831_v2 = vpack.c.bf16 %v2786_v21, %v2786_v21 }
 0x316   : > { %577 = vrot.lane.b32.xlu1 %v575_v23, %s2371_s26  ;;  %v1735_v25 = vpop.f32.mrb[3].mxu1 }
 0x31a   : > { %591 = vrot.lane.b32.xlu1 %v589_v27, %s2371_s26 }
 0x31e   : > { %546 = vrot.lane.b32.xlu1 %v461_v10, %s2369_s23  ;;  %s2380_s23 = smov 120  }
 0x322   : > { %563 = vrot.lane.b32.xlu1 %v561_v29, %s2371_s26 }
 0x388   : > { %v578_v33 = vpop.permute.xlu1 %577 }
 0x389   : > { %v580_v34 = vsub.f32 %v571_v32, %v578_v33 }
 0x38b   : > { %v2792_v35 = vpack.c.bf16 %v580_v34, %v580_v34 }
 0x38c   : > { %v592_v37 = vpop.permute.xlu1 %591 }
 0x38d   : > { %v594_v38 = vadd.f32 %v592_v37, %v585_v36  ;;  %609 = vrot.lane.b32.xlu0 %v2792_v35, %s2372_s27 }
 0x38f   : > { %v2797_v39 = vpack.c.bf16 %v594_v38, %v594_v38 }
 0x390   : > { %v547_v40 = vpop.permute.xlu1 %546 }
 0x391   : > { %v549_v41 = vmul.f32 %v547_v40, %v2786_v21  ;;  %612 = vrot.lane.b32.xlu1 %v2797_v39, %s2373_s21  ;;  %v847_v40 = vld [vmem:[#allocation10 + $0x4] sm:$0xf]  ;;  %s455_s21 = scalar_lea.vmem [#allocation17], %s1647_s22 }
 0x393   : > { %551 = vrot.lane.b32.xlu0 %v549_v41, %s2371_s26  ;;  %v852_v41 = vsel %vm682_vm5, %v847_v40, 0  ;;  %s2382_s26 = smov 116  }
 0x394   : > { %v564_v43 = vpop.permute.xlu1 %563 }
 0x395   : > { %v566_v44 = vadd.f32 %v564_v43, %v556_v42 }
 0x397   : > { %v2802_v45 = vpack.c.bf16 %v566_v44, %v566_v44  ;;  %v727_v44 = vld [vmem:[#allocation10] sm:$0xf] }
 0x399   : > { %602 = vrot.lane.b32.xlu1 %v2802_v45, %s2374_s24  ;;  %s1487_s24 = sshll.u32 %s455_s21, 4  ;;  %s2962_s24 = int_to_ptr.vmem [resolvable:$true] %s1487_s24 }
 0x39a   : > { %s2271_s22 = scalar_lea.vmem %s2962_s24, 128 }
 0x39b   : > { %p2272_p4 = scmp.ne.s32.totalorder %s2962_s24, %s2271_s22 }
 0x39d   : > { %734 = vrot.lane.b32.xlu1 %v2792_v35, %s2375_s20  ;;  %p2273_p1 = pnand %p2272_p4, %p3040_p13 }
 0x39f   : > { %p2274_p3 = pneg %p2273_p1 }
 0x3ff   : > { %v610_v46 = vpop.permute.xlu0 %609 }
 0x403   : > { %v613_v47 = vpop.permute.xlu1 %612 }
 0x404   : > { %v616_v48 = vsel %vm604_vm2, %v610_v46, %v613_v47 }
 0x405   : > { %v621_v50 = vsel %vm618_vm3, %v616_v48, 0  ;;  %v552_v51 = vpop.permute.xlu0 %551  ;;  %v898_v48 = vsel %vm682_vm5, %v727_v44, 0 }
 0x406   : > { %v554_v52 = vsub.f32 %v544_v49, %v552_v51  ;;  %1737 = vmatpush3.bf16.xpose.msra.mxu1 %v621_v50 }
 0x407   : > { %1742 = vmatprep.subr.bf16.mxu1 %v2366_v8 }
 0x408   : > { %v2812_v53 = vpack.c.bf16 %v554_v52, %v554_v52 }
 0x40b   : > { %v603_v54 = vpop.permute.xlu1 %602 }
 0x40c   : > { %v607_v55 = vsel %vm604_vm2, %v2812_v53, %v603_v54 }
 0x40d   : > { %1739 = vmatmul.mubr.msk.bf16.vlgmr.msra.gmra.mrb[4].mxu1 %vm618_vm3, %v607_v55 }
 0x40e   : > { %1744 = vmatprep.mubr.msk.bf16.mxu1 %vm2367_vm1, %v2366_v8 }
 0x40f   : > { %v735_v11 = vpop.permute.xlu1 %734 }
 0x4e0   : > { %v657_v59 = vpop.f32.mrb[4].mxu1 }
 0x4e1   : > { %v663_v60 = vsel %vm600_vm4, %v657_v59, -1e+30  ;;  %v1740_v61 = vpop.f32.mrb[5].mxu1 }
 0x4e2   : > { %v660_v62 = vpop.f32.mrb[6].mxu1  ;;  %v664_v63 = vsel %vm618_vm3, %v663_v60, -inf }
 0x4e3   : > { %665 = vmax.xlane.f32.xlu0 %v664_v63  ;;  %v1741_v1 = vpop.f32.mrb[7].mxu1 }
 0x4f9   : > { %677 = vrot.lane.b32.xlu0 %v2831_v2, %s2376_s14 }
 0x4fd   : > { %736 = vrot.lane.b32.xlu0 %v2797_v39, %s2372_s27  ;;  %s1686_s27 = sshll.u32 %s2456_s15, 7  ;;  %s1474_s15 = scalar_lea.sflag [#allocation4], %s2736_s3 }
 0x570   : > { %v666_v3 = vpop.xlane.xlu0 %665 }
 0x571   : > { %v667_v4 = vsub.f32 %v663_v60, %v666_v3 }
 0x573   : > { %v668_v5 = vmul.f32 1.442695, %v667_v4 }
 0x574   : > { %v678_v6 = vpop.permute.xlu0 %677 }
 0x575   : > { %1997 = vpow2.f32 %v668_v5  ;;  %v684_v7 = vsel %vm682_vm5, %v678_v6, 0 }
 0x576   : > { %1743 = vmatpush3.bf16.msra.mxu1 %v684_v7 }
 0x577   : > { %1748 = vmatprep.subr.bf16.mxu1 %v2366_v8 }
 0x578   : > { %v737_v13 = vpop.permute.xlu0 %736 }
 0x579   : > { %v740_v16 = vsel %vm604_vm2, %v735_v11, %v737_v13 }
 0x57a   : > { %v743_v18 = vsel %vm618_vm3, %v740_v16, 0 }
 0x57f   : > { %v1998_v9 = vpop.eup %1997 }
 0x580   : > { %v670_v10 = vsel %vm618_vm3, %v1998_v9, 0.0 }
 0x581   : > { %671 = vadd.xlane.f32.xlu1 %v670_v10 }
 0x592   : > { %729 = vrot.lane.b32.xlu1 %v2812_v53, %s2377_s18 }
 0x60e   : > { %v672_v12 = vpop.xlane.xlu1 %671 }
 0x60f   : > { %1999 = vrcp.f32 %v672_v12 }
 0x612   : > { %v730_v19 = vpop.permute.xlu1 %729 }
 0x613   : > { %v733_v20 = vsel %vm604_vm2, %v730_v19, %v2802_v45 }
 0x619   : > { %v2000_v14 = vpop.eup %1999 }
 0x61a   : > { %v674_v15 = vmul.f32 %v2000_v14, %v1998_v9 }
 0x61c   : > { %v675_v17 = vpack.c.bf16 %v674_v15, %v674_v15 }
 0x61e   : > { %1745 = vmatmul.mubr.msk.bf16.vlgmr.msra.gmra.mrb[8].mxu1 %vm618_vm3, %v675_v17 }
 0x61f   : > { %1749 = vmatpush3.bf16.xpose.msra.mxu1 %v743_v18  ;;  %1750 = vmatprep.mubr.msk.bf16.mxu1 %vm2367_vm1, %v2366_v8 }
 0x620   : > { %1760 = vmatprep.subr.bf16.mxu1 %v2366_v8 }
 0x626   : > { %1751 = vmatmul.mubr.msk.bf16.vlgmr.msra.gmra.mrb[12].mxu1 %vm618_vm3, %v733_v20 }
 0x627   : > { %1762 = vmatprep.mubr.msk.bf16.mxu1 %vm2367_vm1, %v2366_v8  ;;  %1761 = vmatpush3.bf16.msra.mxu1 %v852_v41 }
 0x628   : > { %1772 = vmatprep.subr.bf16.mxu1 %v2366_v8 }
 0x6f1   : > { %v720_v21 = vpop.f32.mrb[8].mxu1 }
 0x6f2   : > { %v1746_v22 = vpop.f32.mrb[9].mxu1  ;;  %v726_v49 = vpack.c.bf16 %v720_v21, %v720_v21 }
 0x6f3   : > { %v723_v23 = vpop.f32.mrb[10].mxu1 }
 0x6f4   : > { %v1747_v24 = vpop.f32.mrb[11].mxu1 }
 0x6f9   : > { %v779_v25 = vpop.f32.mrb[12].mxu1 }
 0x6fa   : > { %v785_v26 = vsel %vm600_vm4, %v779_v25, -1e+30  ;;  %v1752_v27 = vpop.f32.mrb[13].mxu1 }
 0x6fb   : > { %v782_v28 = vpop.f32.mrb[14].mxu1  ;;  %v786_v29 = vsel %vm618_vm3, %v785_v26, -inf }
 0x6fc   : > { %787 = vmax.xlane.f32.xlu0 %v786_v29  ;;  %v1753_v30 = vpop.f32.mrb[15].mxu1 }
 0x712   : > { %798 = vrot.lane.b32.xlu0 %v2831_v2, %s2378_s1  ;;  %s2384_s1 = smov [#allocation17]  }
 0x716   : > { %949 = vrot.lane.b32.xlu0 %v2797_v39, %s2375_s20 }
 0x71a   : > { %942 = vrot.lane.b32.xlu0 %v2802_v45, %s2377_s18  ;;  %s2960_s18 = scalar_lea.hbm %s3014_s9, %s1686_s27 }
 0x789   : > { %v788_v31 = vpop.xlane.xlu0 %787 }
 0x78a   : > { %v789_v32 = vsub.f32 %v785_v26, %v788_v31 }
 0x78c   : > { %v790_v33 = vmul.f32 1.442695, %v789_v32 }
 0x78d   : > { %v799_v34 = vpop.permute.xlu0 %798 }
 0x78e   : > { %2001 = vpow2.f32 %v790_v33  ;;  %v804_v36 = vsel %vm682_vm5, %v799_v34, 0  ;;  %v1060_v33 = vld [vmem:[#allocation10 + $0x8] sm:$0xf] }
 0x78f   : > { %1755 = vmatpush3.bf16.msra.mxu0 %v804_v36  ;;  %v1065_v34 = vsel %vm682_vm5, %v1060_v33, 0  ;;  %v1992_v33 = vld [vmem:[#allocation13 + $0x28] sm:$0xff]  }
 0x790   : > { %1766 = vmatprep.subr.bf16.mxu0 %v2366_v8 }
 0x791   : > { %v950_v51 = vpop.permute.xlu0 %949 }
 0x795   : > { %v943_v1 = vpop.permute.xlu0 %942 }
 0x798   : > { %v2002_v37 = vpop.eup %2001 }
 0x799   : > { %v792_v38 = vsel %vm618_vm3, %v2002_v37, 0.0 }
 0x79a   : > { %793 = vadd.xlane.f32.xlu1 %v792_v38 }
 0x7ab   : > { %947 = vrot.lane.b32.xlu1 %v2792_v35, %s2379_s25 }
 0x7af   : > { %940 = vrot.lane.b32.xlu1 %v2812_v53, %s2380_s23 }
 0x827   : > { %v794_v42 = vpop.xlane.xlu1 %793 }
 0x828   : > { %2003 = vrcp.f32 %v794_v42 }
 0x82b   : > { %v948_v50 = vpop.permute.xlu1 %947 }
 0x82c   : > { %v953_v52 = vsel %vm604_vm2, %v948_v50, %v950_v51 }
 0x82d   : > { %v956_v60 = vsel %vm618_vm3, %v953_v52, 0 }
 0x82f   : > { %v941_v62 = vpop.permute.xlu1 %940 }
 0x830   : > { %v946_v4 = vsel %vm604_vm2, %v941_v62, %v943_v1 }
 0x832   : > { %v2004_v43 = vpop.eup %2003 }
 0x833   : > { %v796_v46 = vmul.f32 %v2004_v43, %v2002_v37 }
 0x835   : > { %v797_v47 = vpack.c.bf16 %v796_v46, %v796_v46 }
 0x837   : > { %1757 = vmatmul.mubr.msk.bf16.vlgmr.msra.gmra.mrb[0].mxu0 %vm618_vm3, %v797_v47 }
 0x838   : > { %1767 = vmatpush3.bf16.msra.mxu0 %v898_v48  ;;  %1768 = vmatprep.mubr.msk.bf16.mxu0 %vm2367_vm1, %v2366_v8 }
 0x839   : > { %1778 = vmatprep.subr.bf16.mxu0 %v2366_v8 }
 0x83f   : > { %1769 = vmatmul.mubr.msk.bf16.vlgmr.msra.gmra.mrb[4].mxu0 %vm618_vm3, %v726_v49 }
 0x840   : > { %1780 = vmatprep.mubr.msk.bf16.mxu0 %vm2367_vm1, %v2366_v8 }
 0x90a   : > { %v840_v54 = vpop.f32.mrb[0].mxu0 }
 0x90b   : > { %v846_v55 = vpack.c.bf16 %v840_v54, %v840_v54  ;;  %v1758_v56 = vpop.f32.mrb[1].mxu0 }
 0x90c   : > { %v843_v59 = vpop.f32.mrb[2].mxu0 }
 0x90d   : > { %v1759_v61 = vpop.f32.mrb[3].mxu0  ;;  %1763 = vmatmul.mubr.msk.bf16.vlgmr.msra.gmra.mrb[16].mxu1 %vm618_vm3, %v846_v55  ;;  %v1228_v55 = vld [vmem:[#allocation10 + $0xc] sm:$0xf] }
 0x90e   : > { %1773 = vmatpush3.bf16.xpose.msra.mxu1 %v956_v60  ;;  %1774 = vmatprep.mubr.msk.bf16.mxu1 %vm2367_vm1, %v2366_v8  ;;  %v1233_v56 = vsel %vm682_vm5, %v1228_v55, 0 }
 0x90f   : > { %1784 = vmatprep.subr.bf16.mxu1 %v2366_v8 }
 0x912   : > { %v934_v63 = vpop.f32.mrb[4].mxu0 }
 0x913   : > { %v1770_v3 = vpop.f32.mrb[5].mxu0 }
 0x914   : > { %v937_v5 = vpop.f32.mrb[6].mxu0 }
 0x915   : > { %v1771_v6 = vpop.f32.mrb[7].mxu0  ;;  %1775 = vmatmul.mubr.msk.bf16.vlgmr.msra.gmra.mrb[20].mxu1 %vm618_vm3, %v946_v4 }
 0x916   : > { %1786 = vmatprep.mubr.msk.bf16.mxu1 %vm2367_vm1, %v2366_v8  ;;  %1785 = vmatpush3.bf16.msra.mxu1 %v1065_v34  ;;  %v1993_v34 = vld [vmem:[#allocation13 + $0x30] sm:$0xff]  }
 0x917   : > { %1796 = vmatprep.subr.bf16.mxu1 %v2366_v8 }
 0x9e0   : > { %v888_v7 = vpop.f32.mrb[16].mxu1 }
 0x9e1   : > { %v2888_v9 = vadd.f32 %v934_v63, %v888_v7  ;;  %v1764_v10 = vpop.f32.mrb[17].mxu1 }
 0x9e2   : > { %v891_v11 = vpop.f32.mrb[18].mxu1 }
 0x9e3   : > { %v1765_v12 = vpop.f32.mrb[19].mxu1 }
 0x9e8   : > { %v992_v13 = vpop.f32.mrb[20].mxu1 }
 0x9e9   : > { %v998_v14 = vsel %vm600_vm4, %v992_v13, -1e+30  ;;  %v1776_v15 = vpop.f32.mrb[21].mxu1 }
 0x9ea   : > { %v995_v16 = vpop.f32.mrb[22].mxu1  ;;  %v999_v17 = vsel %vm618_vm3, %v998_v14, -inf }
 0x9eb   : > { %1000 = vmax.xlane.f32.xlu1 %v999_v17  ;;  %v1777_v18 = vpop.f32.mrb[23].mxu1 }
 0x9fc   : > { %1115 = vrot.lane.b32.xlu1 %v2792_v35, %s2381_s17 }
 0xa00   : > { %1117 = vrot.lane.b32.xlu1 %v2797_v39, %s2379_s25  ;;  %s2275_s25 = sshll.u32 %s2384_s1, 4  ;;  %s2276_s25 = int_to_ptr.vmem [resolvable:$false] %s2275_s25 }
 0xa01   : > { %p2278_p2 = scmp.lt.s32.totalorder %s2962_s24, %s2276_s25 }
 0xa04   : > { %1110 = vrot.lane.b32.xlu1 %v2802_v45, %s2380_s23  ;;  %s2277_s23 = scalar_lea.vmem %s2276_s25, 256 }
 0xa05   : > { %p2279_p0 = scmp.lt.s32.totalorder %s2277_s23, %s2271_s22 }
 0xa07   : > { %p2280_p10 = por %p2279_p0, %p2278_p2 }
 0xa09   : > { %p2281_p11 = pnand %p2280_p10, %p2274_p3 }
 0xa78   : > { %v1001_v19 = vpop.xlane.xlu1 %1000 }
 0xa79   : > { %v1002_v20 = vsub.f32 %v998_v14, %v1001_v19 }
 0xa7b   : > { %v1003_v21 = vmul.f32 1.442695, %v1002_v20 }
 0xa7c   : > { %v1116_v39 = vpop.permute.xlu1 %1115 }
 0xa7d   : > { %2005 = vpow2.f32 %v1003_v21 }
 0xa80   : > { %v1118_v25 = vpop.permute.xlu1 %1117 }
 0xa81   : > { %v1121_v28 = vsel %vm604_vm2, %v1116_v39, %v1118_v25 }
 0xa82   : > { %v1124_v30 = vsel %vm618_vm3, %v1121_v28, 0 }
 0xa84   : > { %v1111_v31 = vpop.permute.xlu1 %1110 }
 0xa87   : > { %v2006_v22 = vpop.eup %2005 }
 0xa88   : > { %v1005_v23 = vsel %vm618_vm3, %v2006_v22, 0.0 }
 0xa89   : > { %1006 = vadd.xlane.f32.xlu0 %v1005_v23  ;;  %v1985_v23 = vld [vmem:[#allocation11] sm:$0xff]  }
 0xa9f   : > { %1011 = vrot.lane.b32.xlu0 %v2831_v2, %s2368_s16  ;;  %s2383_s16 = smov 40  }
 0xaa3   : > { %1108 = vrot.lane.b32.xlu0 %v2812_v53, %s2382_s26 }
 0xb16   : > { %v1007_v35 = vpop.xlane.xlu0 %1006 }
 0xb17   : > { %2007 = vrcp.f32 %v1007_v35  ;;  %v1986_v35 = vld [vmem:[#allocation11 + $0x8] sm:$0xff]  }
 0xb1a   : > { %v1012_v24 = vpop.permute.xlu0 %1011 }
 0xb1b   : > { %v1017_v45 = vsel %vm682_vm5, %v1012_v24, 0 }
 0xb1c   : > { %1779 = vmatpush3.bf16.msra.mxu0 %v1017_v45 }
 0xb1d   : > { %1790 = vmatprep.subr.bf16.mxu0 %v2366_v8 }
 0xb1e   : > { %v1109_v53 = vpop.permute.xlu0 %1108 }
 0xb1f   : > { %v1114_v32 = vsel %vm604_vm2, %v1109_v53, %v1111_v31  ;;  %v1989_v53 = vld [vmem:[#allocation13 + $0x10] sm:$0xff]   ;;  %v1990_v31 = vld [vmem:[#allocation13 + $0x18] sm:$0xff]  }
 0xb21   : > { %v2008_v26 = vpop.eup %2007 }
 0xb22   : > { %v1009_v27 = vmul.f32 %v2008_v26, %v2006_v22  ;;  %v1673_v26 = vld [vmem:[#allocation7] ss:$0 sm:$0xff] }
 0xb24   : > { %v1010_v29 = vpack.c.bf16 %v1009_v27, %v1009_v27 }
 0xb26   : > { %1781 = vmatmul.mubr.msk.bf16.vlgmr.msra.gmra.mrb[8].mxu0 %vm618_vm3, %v1010_v29 }
 0xb27   : > { %1791 = vmatpush3.bf16.xpose.msra.mxu0 %v1124_v30  ;;  %1792 = vmatprep.mubr.msk.bf16.mxu0 %vm2367_vm1, %v2366_v8  ;;  %v1988_v30 = vld [vmem:[#allocation13 + $0x8] sm:$0xff]  }
 0xb28   : > { %1802 = vmatprep.subr.bf16.mxu0 %v2366_v8 }
 0xb2e   : > { %1793 = vmatmul.mubr.msk.bf16.vlgmr.msra.gmra.mrb[12].mxu0 %vm618_vm3, %v1114_v32  ;;  %v1991_v32 = vld [vmem:[#allocation13 + $0x20] sm:$0xff]  }
 0xb2f   : > { %1804 = vmatprep.mubr.msk.bf16.mxu0 %vm2367_vm1, %v2366_v8  ;;  %1803 = vmatpush3.bf16.msra.mxu0 %v1233_v56 }
 0xb30   : > { %1816 = vmatprep.subr.bf16.mxu0 %v2366_v8 }
 0xbf9   : > { %v1053_v36 = vpop.f32.mrb[8].mxu0 }
 0xbfa   : > { %v1059_v37 = vpack.c.bf16 %v1053_v36, %v1053_v36  ;;  %v1782_v38 = vpop.f32.mrb[9].mxu0  ;;  %v1994_v36 = vld [vmem:[#allocation13 + $0x38] sm:$0xff]  }
 0xbfb   : > { %v1056_v40 = vpop.f32.mrb[10].mxu0 }
 0xbfc   : > { %v1783_v41 = vpop.f32.mrb[11].mxu0  ;;  %1787 = vmatmul.mubr.msk.bf16.vlgmr.msra.gmra.mrb[24].mxu1 %vm618_vm3, %v1059_v37 }
 0xbfd   : > { %1798 = vmatprep.mubr.msk.bf16.mxu1 %vm2367_vm1, %v2366_v8 }
 0xc01   : > { %v1160_v42 = vpop.f32.mrb[12].mxu0 }
 0xc02   : > { %v1166_v43 = vsel %vm600_vm4, %v1160_v42, -1e+30  ;;  %v1794_v44 = vpop.f32.mrb[13].mxu0 }
 0xc03   : > { %v1163_v46 = vpop.f32.mrb[14].mxu0  ;;  %v1167_v47 = vsel %vm618_vm3, %v1166_v43, -inf }
 0xc04   : > { %1168 = vmax.xlane.f32.xlu0 %v1167_v47  ;;  %v1795_v48 = vpop.f32.mrb[15].mxu0 }
 0xc1a   : > { %1179 = vrot.lane.b32.xlu0 %v2831_v2, %s2383_s16 }
 0xc91   : > { %v1169_v49 = vpop.xlane.xlu0 %1168 }
 0xc92   : > { %v1170_v50 = vsub.f32 %v1166_v43, %v1169_v49 }
 0xc94   : > { %v1171_v51 = vmul.f32 1.442695, %v1170_v50 }
 0xc95   : > { %v1180_v52 = vpop.permute.xlu0 %1179 }
 0xc96   : > { %2009 = vpow2.f32 %v1171_v51  ;;  %v1185_v54 = vsel %vm682_vm5, %v1180_v52, 0 }
 0xc97   : > { %1797 = vmatpush3.bf16.msra.mxu1 %v1185_v54 }
 0xc98   : > { %1808 = vmatprep.subr.bf16.mxu1 %v2366_v8 }
 0xca0   : > { %v2010_v57 = vpop.eup %2009 }
 0xca1   : > { %v1173_v58 = vsel %vm618_vm3, %v2010_v57, 0.0 }
 0xca2   : > { %1174 = vadd.xlane.f32.xlu1 %v1173_v58 }
 0xccf   : > { %v1101_v2 = vpop.f32.mrb[24].mxu1 }
 0xcd0   : > { %v1107_v59 = vadd.f32 %v1101_v2, %v2888_v9  ;;  %v1788_v60 = vpop.f32.mrb[25].mxu1 }
 0xcd1   : > { %v1104_v61 = vpop.f32.mrb[26].mxu1 }
 0xcd2   : > { %v1789_v62 = vpop.f32.mrb[27].mxu1 }
 0xd2f   : > { %v1175_v63 = vpop.xlane.xlu1 %1174 }
 0xd30   : > { %2011 = vrcp.f32 %v1175_v63 }
 0xd3a   : > { %v2012_v1 = vpop.eup %2011 }
 0xd3b   : > { %v1177_v3 = vmul.f32 %v2012_v1, %v2010_v57 }
 0xd3d   : > { %v1178_v4 = vpack.c.bf16 %v1177_v3, %v1177_v3 }
 0xd3f   : > { %1799 = vmatmul.mubr.msk.bf16.vlgmr.msra.gmra.mrb[28].mxu1 %vm618_vm3, %v1178_v4 }
 0xd40   : > { %1812 = vmatprep.mubr.msk.bf16.mxu1 %vm2367_vm1, %v2366_v8  ;;  %1809 = vmatpush3.bf16.msra.mxu1 %v1985_v23 }
 0xd41   : > { %1810 = vmatprep.subr.bf16.mxu1 %v2366_v8 }
 0xd44   : > { %1811 = vmatpush3.bf16.msra.mxu1 %v1986_v35 }
 0xe12   : > { %v1221_v5 = vpop.f32.mrb[28].mxu1 }
 0xe13   : > { %v1227_v6 = vpack.c.bf16 %v1221_v5, %v1221_v5  ;;  %v1800_v7 = vpop.f32.mrb[29].mxu1 }
 0xe14   : > { %v1224_v10 = vpop.f32.mrb[30].mxu1 }
 0xe15   : > { %v1801_v11 = vpop.f32.mrb[31].mxu1  ;;  %1805 = vmatmul.mubr.msk.bf16.vlgmr.msra.gmra.mrb[16].mxu0 %vm618_vm3, %v1227_v6 }
 0xe16   : > { %1832 = vmatprep.mubr.msk.bf16.mxu0 %vm2367_vm1, %v2366_v8 }
 0xee8   : > { %v1269_v9 = vpop.f32.mrb[16].mxu0 }
 0xee9   : > { %v1275_v12 = vadd.f32 %v1269_v9, %v1107_v59  ;;  %v1806_v13 = vpop.f32.mrb[17].mxu0 }
 0xeea   : > { %v1272_v14 = vpop.f32.mrb[18].mxu0 }
 0xeeb   : > { %v2938_v15 = vadd.f32 %v1275_v12, %v2762_v0  ;;  %v1807_v16 = vpop.f32.mrb[19].mxu0  ;;  %v1987_v0 = vld [vmem:[#allocation13] sm:$0xff]  }
 0xeec   : > { %1817 = vmatpush3.bf16.msra.mxu0 %v1987_v0 }
 0xeed   : > { %v1277_v17 = vsel %vm462_vm0, %v2938_v15, 0.0  ;;  %1818 = vmatprep.subr.bf16.mxu0 %v2366_v8 }
 0xeee   : > { %1278 = vadd.xlane.f32.xlu1 %v1277_v17 }
 0xef0   : > { %1819 = vmatpush3.bf16.msra.mxu0 %v1988_v30 }
 0xef1   : > { %1820 = vmatprep.subr.bf16.mxu0 %v2366_v8 }
 0xef4   : > { %1821 = vmatpush3.bf16.msra.mxu0 %v1989_v53 }
 0xef5   : > { %1822 = vmatprep.subr.bf16.mxu0 %v2366_v8 }
 0xef8   : > { %1823 = vmatpush3.bf16.msra.mxu0 %v1990_v31 }
 0xef9   : > { %1824 = vmatprep.subr.bf16.mxu0 %v2366_v8 }
 0xefc   : > { %1825 = vmatpush3.bf16.msra.mxu0 %v1991_v32 }
 0xefd   : > { %1826 = vmatprep.subr.bf16.mxu0 %v2366_v8 }
 0xf00   : > { %1827 = vmatpush3.bf16.msra.mxu0 %v1992_v33 }
 0xf01   : > { %1828 = vmatprep.subr.bf16.mxu0 %v2366_v8 }
 0xf04   : > { %1829 = vmatpush3.bf16.msra.mxu0 %v1993_v34 }
 0xf05   : > { %1830 = vmatprep.subr.bf16.mxu0 %v2366_v8 }
 0xf08   : > { %1831 = vmatpush3.bf16.msra.mxu0 %v1994_v36 }
 0xf7b   : > { %v1279_v18 = vpop.xlane.xlu1 %1278 }
 0xf7c   : > { %v1280_v19 = vmul.f32 0.03125, %v1279_v18 }
 0xf7e   : > { %v1281_v20 = vsub.f32 %v2938_v15, %v1280_v19 }
 0xf80   : > { %v1282_v21 = vmul.f32 %v1281_v20, %v1281_v20 }
 0xf82   : > { %v1283_v22 = vsel %vm462_vm0, %v1282_v21, 0.0 }
 0xf83   : > { %1284 = vadd.xlane.f32.xlu1 %v1283_v22 }
0x1010   : > { %v1285_v39 = vpop.xlane.xlu1 %1284 }
0x1011   : > { %v1286_v24 = vmul.f32 0.03125, %v1285_v39 }
0x1013   : > { %v1287_v45 = vadd.f32 1e-05, %v1286_v24 }
0x1015   : > { %2013 = vrsqrt.f32 %v1287_v45 }
0x101f   : > { %v2014_v25 = vpop.eup %2013 }
0x1020   : > { %v1289_v27 = vmul.f32 %v2014_v25, %v1281_v20 }
0x1022   : > { %v1296_v28 = vmul.f32 %v1673_v26, %v1289_v27 }
0x1024   : > { %v1297_v29 = vpack.c.bf16 %v1296_v28, %v1296_v28 }
0x1026   : > { %1813 = vmatmul.mubr.msk.bf16.vlgmr.msra.gmra.mrb[32].mxu1 %vm462_vm0, %v1297_v29 }
0x10f9   : > { %v1351_v37 = vpop.f32.mrb[32].mxu1 }
0x10fa   : > { %v1358_v38 = vmul.f32 0.044715, %v1351_v37  ;;  %v1814_v40 = vpop.f32.mrb[33].mxu1  ;;  %v1357_v49 = vmul.f32 0.5, %v1351_v37 }
0x10fb   : > { %v1354_v41 = vpop.f32.mrb[34].mxu1 }
0x10fc   : > { %v1359_v42 = vmul.f32 %v1358_v38, %v1351_v37  ;;  %v1815_v43 = vpop.f32.mrb[35].mxu1 }
0x10fe   : > { %v1360_v44 = vmul.f32 %v1359_v42, %v1351_v37 }
0x1100   : > { %v1361_v46 = vadd.f32 %v1360_v44, %v1351_v37 }
0x1102   : > { %v1362_v47 = vmul.f32 0.7978846, %v1361_v46 }
0x1104   : > { %2015 = vtanh.f32 %v1362_v47 }
0x110e   : > { %v2016_v48 = vpop.eup %2015 }
0x110f   : > { %v1364_v50 = vadd.f32 1.0, %v2016_v48 }
0x1111   : > { %v1365_v51 = vmul.f32 %v1364_v50, %v1357_v49 }
0x1113   : > { %v1366_v52 = vpack.c.bf16 %v1365_v51, %v1365_v51 }
0x1115   : > { %1833 = vmatmul.mubr.bf16.vlgmr.msra.gmra.mrb[20].mxu0 %v1366_v52 }
0x11e8   : > { %v1465_v8 = vpop.f32.mrb[20].mxu0 }
0x11e9   : > { %v1471_v54 = vadd.f32 %v1465_v8, %v2938_v15  ;;  %v1834_v57 = vpop.f32.mrb[21].mxu0 }
0x11ea   : > { %v1468_v58 = vpop.f32.mrb[22].mxu0 }
0x11eb   : > { %v1835_v55 = vpop.f32.mrb[23].mxu0  ;;  %1472 = vst.msk [vmem:[%s455_s21] sm:$0xff] %vm462_vm0, %v1471_v54 }
0x11ec   : > { %2284 = shalt.err (!%p2281_p11)
}
0x11ed   : > { %s2285_s3 = scalar_lea.hbm %s2960_s18, 128  ;;  %s2289_s16 = scalar_lea.hbm %s3014_s9, 256 }
0x11ee   : > { %p2286_p12 = scmp.ne.s32.totalorder %s2960_s18, %s2285_s3  ;;  %p2290_p7 = scmp.lt.u32.totalorder %s2960_s18, %s3014_s9 }
0x11ef   : > { %p2291_p6 = scmp.lt.u32.totalorder %s2289_s16, %s2285_s3  ;;  %p2293_p4 = scmp.lt.u32.totalorder %s2285_s3, %s2960_s18 }
0x11f0   : > { %p2287_p8 = pnand %p2286_p12, %p3040_p13 }
0x11f1   : > { %p2292_p9 = por %p2291_p6, %p2290_p7 }
0x11f2   : > { %p2288_p5 = pneg %p2287_p8 }
0x11f3   : > { %p2294_p1 = por %p2293_p4, %p2292_p9 }
0x11f5   : > { %p2295_p3 = pnand %p2294_p1, %p2288_p5 }
0x11f7   : > { %2298 = shalt.err (!%p2295_p3)
}
0x11f8   : > { %1870 = dma.vmem_to_hbm [thread:$0]  (%p3040_p13), %s2962_s24, 128, %s2960_s18, %s1474_s15  }
0x11f9 PF: > { %s1499_s20 = sand.u32 1, %s2341_s30   ;;  %p3041_p2 = scmp.ne.s32.totalorder %s3029_s13, 0 }
0x11fa   : > { %p3042_p0 = scmp.ge.s32.totalorder %s2353_s12, 2  ;;  %s1500_s14 = scalar_lea.sflag [#allocation4], %s1499_s20 }
0x11fc   : > { %p1902_p10 = pnand %p3042_p0, %p3041_p2 }
0x11fe   : > { %2336 = dma.done.wait (!%p1902_p10), %s1500_s14, 128  }
0x11ff   : > { %2338 = vsyncadd (!%p1902_p10), %s1500_s14, 4294967168  ;;  %p26_p11 = scmp.ge.s32.totalorder %s2660_s19, 4   ;;  %s3043_s30 = smov %s2345_s10 }
0x1200   : > { %s3044_s10 = smov %s2349_s11  ;;  %s3045_s11 = smov %s2671_s28 }
0x1201   : > { %s3046_s12 = smov %s2660_s19  ;;  %28 = sbr.rel (!%p26_p11) target bundleno = 12 (0xc), region = 133 }
0x1208   :  { %1505 = vsyncpa [#allocation3], 1 }
0x1209   :  { %1507 = vsyncpa [#allocation3 + $0x1], 1 }
0x120a   :  { %1508 = vsyncpa [#allocation6], 1 }
0x120b   :  { %1509 = vsyncpa [#allocation9], 1 }
0x120c   :  { %1510 = vsyncpa [#allocation12], 1 }
0x120d   :  { %1511 = vsyncpa [#allocation15], 1 }
0x120e   :  { %1512 = vsyncpa [#allocation4], 1 }
0x120f   :  { %1514 = vsyncpa [#allocation4 + $0x1], 1 }

</bundles_post_ra>
